<compile_context>
chip_gen: v6e
topology: v6e:2x2x1
jax: 0.10.0
libtpu: 0.0.40
codegen_flags: <defaults>
</compile_context>

<pallas_src>
import math

import jax
import jax.numpy as jnp
import numpy as np
from jax import lax
from jax.experimental import pallas as pl
from jax.experimental.pallas import tpu as pltpu


# --------------------------------------------------------------------------- #
# Weight construction (matches CascadeGaussianSmoothing.__init__)
# --------------------------------------------------------------------------- #
def _build_gaussian_kernels(kernel_size: int, sigma: float):
    ks = [kernel_size, kernel_size]
    cascade_coefficients = [0.5, 1.0, 2.0]
    sigmas = [[c * sigma, c * sigma] for c in cascade_coefficients]

    coords = [np.arange(s, dtype=np.float32) for s in ks]
    meshgrids = np.meshgrid(*coords, indexing="ij")  # torch.meshgrid default 'ij'

    kernels2d, kernels1d = [], []
    for sig in sigmas:
        kernel = np.ones_like(meshgrids[0])
        for size_1d, std_1d, grid in zip(ks, sig, meshgrids):
            mean = (size_1d - 1) / 2
            kernel *= (1.0 / (std_1d * math.sqrt(2 * math.pi))
                       * np.exp(-(((grid - mean) / std_1d) ** 2) / 2))
        kernel = kernel / kernel.sum()
        kernels2d.append(kernel.astype(np.float32))

        mean = (kernel_size - 1) / 2
        g = np.exp(-(((np.arange(kernel_size, dtype=np.float32) - mean) / sig[0]) ** 2) / 2)
        kernels1d.append((g / g.sum()).astype(np.float32))
    return kernels2d, kernels1d


# --------------------------------------------------------------------------- #
# Hardware queries (best effort, safe fallbacks)
# --------------------------------------------------------------------------- #
def _vmem_capacity_bytes() -> int:
    try:
        info = pltpu.get_tpu_info()
        return int(getattr(info, "vmem_capacity_bytes", 64 << 20))
    except Exception:
        return 64 << 20


def _num_tensorcores() -> int:
    try:
        info = pltpu.get_tpu_info()
        for attr in ("num_cores", "num_tensorcores", "tensorcores_per_chip"):
            v = getattr(info, attr, None)
            if v:
                return max(1, int(v))
    except Exception:
        pass
    try:
        v = getattr(jax.devices()[0], "num_cores", None)
        if v:
            return max(1, int(v))
    except Exception:
        pass
    return 1


# --------------------------------------------------------------------------- #
# Kernel factory
# --------------------------------------------------------------------------- #
def _make_kernel(*, Bs, G, H, W, pad, kh, kw, w_avg, g1ds, use_separable, TH, LC):
    Hp, Wp = H + 2 * pad, W + 2 * pad
    L = G * Wp                 # padded-scratch lane width
    L_out = L - 2 * pad        # packed output lane width

    w2d = [[float(w_avg[i, j]) for j in range(kw)] for i in range(kh)]
    g1 = [[float(v) for v in g] for g in g1ds]

    n_full = H // TH
    rem = H - n_full * TH
    chunk_starts = list(range(0, L_out, LC))

    def kernel(x_ref, o_ref, xp_ref):
        # -------- fused reflect padding into the VMEM scratch (once per step) -----
        for g in range(G):
            src = g * W
            dst = g * Wp
            # center columns of plane g
            xp_ref[:, pad:pad + H, dst + pad:dst + pad + W] = x_ref[:, :, src:src + W]
            if pad:
                # left halo: padded col k = x[pad - k]   (one store per side)
                left = jnp.concatenate(
                    [x_ref[:, :, src + pad - k:src + pad - k + 1] for k in range(pad)],
                    axis=2)
                xp_ref[:, pad:pad + H, dst:dst + pad] = left
                # right halo: padded col pad+W+k = x[W-2-k]
                right = jnp.concatenate(
                    [x_ref[:, :, src + W - 2 - k:src + W - 1 - k] for k in range(pad)],
                    axis=2)
                xp_ref[:, pad:pad + H, dst + pad + W:dst + Wp] = right
        if pad:
            # top/bottom row halos from already column-padded rows -> corners correct
            top = jnp.concatenate(
                [xp_ref[:, 2 * pad - k:2 * pad - k + 1, :] for k in range(pad)], axis=1)
            xp_ref[:, 0:pad, :] = top
            bot = jnp.concatenate(
                [xp_ref[:, pad + H - 2 - k:pad + H - 1 - k, :] for k in range(pad)], axis=1)
            xp_ref[:, pad + H:Hp, :] = bot

        # -------- register-tiled tap accumulation, one store per output tile ------
        def do_tile(b, r0, rows, c0, lc):
            if use_separable:
                ts = [jnp.zeros((rows + 2 * pad, lc), jnp.float32) for _ in range(3)]
                for j in range(kw):
                    col = xp_ref[b, pl.ds(r0, rows + 2 * pad), pl.ds(c0 + j, lc)]
                    ts = [t + gc[j] * col for t, gc in zip(ts, g1)]
                acc = jnp.zeros((rows, lc), jnp.float32)
                for i in range(kh):
                    for t, gc in zip(ts, g1):
                        acc = acc + (gc[i] / 3.0) * t[i:i + rows, :]
            else:
                acc = jnp.zeros((rows, lc), jnp.float32)
                for j in range(kw):
                    # one (possibly unaligned) lane-offset load, reused for kh sublane shifts
                    col = xp_ref[b, pl.ds(r0, rows + 2 * pad), pl.ds(c0 + j, lc)]
                    for i in range(kh):
                        acc = acc + w2d[i][j] * col[i:i + rows, :]
            o_ref[b, pl.ds(r0, rows), pl.ds(c0, lc)] = acc.astype(o_ref.dtype)

        def do_strip(b, r0, rows):
            for c0 in chunk_starts:
                lc = min(LC, L_out - c0)
                do_tile(b, r0, rows, c0, lc)

        for b in range(Bs):
            if n_full <= 4:
                for s in range(n_full):
                    do_strip(b, s * TH, TH)
            elif n_full > 0:
                def body(s, carry):
                    do_strip(b, pl.multiple_of(s * TH, TH), TH)
                    return carry
                lax.fori_loop(0, n_full, body, 0)
            if rem:
                do_strip(b, n_full * TH, rem)

    return kernel


# --------------------------------------------------------------------------- #
# Wrapper
# --------------------------------------------------------------------------- #
def cascade_gaussian_smoothing(x, kernel_size: int, sigma: float):
    """x: (N, C, H, W) float32, C must equal 3 (module hardcodes 3 channels)."""
    assert x.ndim == 4 and x.shape[1] == 3, "module hardcodes 3 channels"
    assert kernel_size % 2 == 1, "odd kernel_size required to preserve spatial size"
    N, C, H, W = x.shape
    pad = kernel_size // 2
    assert pad < H and pad < W, "reflect padding requires pad < spatial size"
    x = x.astype(jnp.float32)

    k2d, k1d = _build_gaussian_kernels(kernel_size, sigma)
    kh = kw = kernel_size
    w_avg = ((k2d[0] + k2d[1] + k2d[2]) / 3.0).astype(np.float32)

    P = N * C
    Hp, Wp = H + 2 * pad, W + 2 * pad

    num_cores = _num_tensorcores()
    vmem_cap = _vmem_capacity_bytes()
    budget = min(int(vmem_cap * 0.6), 96 << 20)

    TH = 8  # output rows per register tile (sublane tile)
    # separable only wins once the per-strip horizontal recompute is accounted for
    use_separable = 3 * (kw * (TH + 2 * pad) / TH + kh) < kh * kw
    LC = 256 if use_separable else 512  # lanes per register tile

    def group_bytes(g):  # full per-group footprint (double-buffered in/out + scratch)
        L = g * Wp
        Lo = L - 2 * pad
        tile_tmp = 4 * (TH + 2 * pad) * min(LC, Lo) * 5
        return 4 * (2 * H * g * W + 2 * H * Lo + Hp * L) + tile_tmp

    # ---- choose G: planes packed side-by-side along the lane axis ----
    divisors = [d for d in range(1, P + 1) if P % d == 0]

    def g_score(d):
        L = d * Wp
        ng = P // d
        feasible = group_bytes(d) <= budget
        lane_ok = L >= 128
        core_ok = (num_cores == 1) or (ng % num_cores == 0)
        tie = -d if lane_ok else L   # lane-dense: smallest sufficient G; else widest
        return (feasible, lane_ok, core_ok, tie)

    G = max(divisors, key=g_score)
    NG = P // G
    L = G * Wp
    L_out = L - 2 * pad

    gb = group_bytes(G)
    if gb > budget:
        # TODO(synk): halo'd H-strip tiling via manual DMA for planes whose whole-plane
        # working set exceeds VMEM (matters on v7x's 64 MiB VMEM for >~2 MPix planes).
        raise ValueError(
            f"per-group VMEM footprint {gb} B exceeds budget {budget} B; "
            "H-strip tiling not implemented")

    # ---- choose Bs (groups per block) from the real footprint ----
    Bs = max(1, min(NG, budget // gb, 16))
    while NG % Bs:
        Bs -= 1
    if num_cores > 1 and NG >= num_cores:
        # keep the block count a multiple of the TensorCore count (megacore balance)
        while Bs > 1 and (NG // Bs) % num_cores != 0:
            Bs -= 1
            while NG % Bs:
                Bs -= 1

    # ---- pack G planes along the lane axis ----
    xg = x.reshape(NG, G, H, W).transpose(0, 2, 1, 3).reshape(NG, H, G * W)

    kernel_fn = _make_kernel(Bs=Bs, G=G, H=H, W=W, pad=pad, kh=kh, kw=kw,
                             w_avg=w_avg, g1ds=k1d, use_separable=use_separable,
                             TH=TH, LC=LC)

    vmem_limit = int(min(int(vmem_cap * 0.9),
                         max(32 << 20, int(1.3 * Bs * gb) + (4 << 20))))

    out_packed = pl.pallas_call(
        kernel_fn,
        out_shape=jax.ShapeDtypeStruct((NG, H, L_out), jnp.float32),
        grid=(NG // Bs,),
        in_specs=[pl.BlockSpec((Bs, H, G * W), lambda i: (i, 0, 0))],
        out_specs=pl.BlockSpec((Bs, H, L_out), lambda i: (i, 0, 0)),
        scratch_shapes=[pltpu.VMEM((Bs, Hp, L), jnp.float32)],
        compiler_params=pltpu.CompilerParams(
            dimension_semantics=("parallel",),
            vmem_limit_bytes=vmem_limit),
    )(xg)

    # ---- unpack: plane g of group q lives at lanes [g*Wp, g*Wp + W) ----
    outp = jnp.pad(out_packed, ((0, 0), (0, 0), (0, 2 * pad)))       # (NG, H, G*Wp)
    outp = outp.reshape(NG, H, G, Wp)[..., :W]                       # (NG, H, G, W)
    return outp.transpose(0, 2, 1, 3).reshape(N, C, H, W)


# --------------------------------------------------------------------------- #
# Pure-JAX reference (matches the PyTorch module's forward)
# --------------------------------------------------------------------------- #
def _reference(x, kernel_size: int, sigma: float):
    k2d, _ = _build_gaussian_kernels(kernel_size, sigma)
    pad = int(kernel_size / 2)
    xp = jnp.pad(x, ((0, 0), (0, 0), (pad, pad), (pad, pad)), mode="reflect")
    C = x.shape[1]

    def depthwise(xpad, w):
        wj = jnp.asarray(np.tile(w[None, None, :, :], (C, 1, 1, 1)))  # (C,1,kh,kw)
        return lax.conv_general_dilated(
            xpad, wj, window_strides=(1, 1), padding="VALID",
            dimension_numbers=("NCHW", "OIHW", "NCHW"), feature_group_count=C)

    g1 = depthwise(xp, k2d[0])
    g2 = depthwise(xp, k2d[1])
    g3 = depthwise(xp, k2d[2])
    return (g1 + g2 + g3) / 3.0


if __name__ == "__main__":
    key = jax.random.PRNGKey(0)
    N, C, Hs, Ws = 2, 3, 16, 16            # module requires C == 3
    x = jax.random.normal(key, (N, C, Hs, Ws), dtype=jnp.float32)

    # Config 1: kernel_size=5 -> pre-averaged 2D tap path.
    out5 = jax.block_until_ready(cascade_gaussian_smoothing(x, 5, 1.0))
    ref5 = jax.block_until_ready(_reference(x, 5, 1.0))
    assert out5.shape == (N, C, Hs, Ws)
    np.testing.assert_allclose(np.asarray(out5), np.asarray(ref5), rtol=1e-5, atol=1e-5)

    # Config 2: kernel_size=13 -> rank-3 separable path.
    out13 = jax.block_until_ready(cascade_gaussian_smoothing(x, 13, 2.0))
    ref13 = jax.block_until_ready(_reference(x, 13, 2.0))
    assert out13.shape == (N, C, Hs, Ws)
    np.testing.assert_allclose(np.asarray(out13), np.asarray(ref13), rtol=1e-5, atol=1e-5)

    print("KERNEL_OK")
</pallas_src>

<mosaic_0001>
module attributes {stable_mosaic.version = 11 : i64} {
  func.func @kernel(%arg0: i32, %arg1: memref<1x16x96xf32, #tpu.memory_space<vmem>>, %arg2: memref<1x16x116xf32, #tpu.memory_space<vmem>>, %arg3: memref<1x20x120xf32, #tpu.memory_space<vmem>>) attributes {dimension_semantics = [#tpu.dimension_semantics<parallel>], iteration_bounds = array<i64: 1>, scalar_prefetch = 0 : i64, scratch_operands = 1 : i64, tpu.core_type = #tpu.core_type<tc>, window_params = [{transform_indices = @transform_0, window_bounds = array<i64: 1, 16, 96>}, {transform_indices = @transform_1, window_bounds = array<i64: 1, 16, 116>}]} {
    %c0 = arith.constant 0 : index
    %c0_0 = arith.constant 0 : index
    %c0_1 = arith.constant 0 : index
    %0 = vector.load %arg1[%c0, %c0_0, %c0_1] : memref<1x16x96xf32, #tpu.memory_space<vmem>>, vector<1x16x16xf32>
    %c0_2 = arith.constant 0 : index
    %c2 = arith.constant 2 : index
    %c2_3 = arith.constant 2 : index
    %1 = vector.load %arg3[%c0_2, %c2, %c2_3] : memref<1x20x120xf32, #tpu.memory_space<vmem>>, vector<1x16x16xf32>
    tpu.vector_store %arg3[%c0_2, %c2, %c2_3], %0 {strides = array<i32>} : memref<1x20x120xf32, #tpu.memory_space<vmem>>, vector<1x16x16xf32>,
    %c0_4 = arith.constant 0 : index
    %c0_5 = arith.constant 0 : index
    %c2_6 = arith.constant 2 : index
    %2 = vector.load %arg1[%c0_4, %c0_5, %c2_6] : memref<1x16x96xf32, #tpu.memory_space<vmem>>, vector<1x16x1xf32>
    %c0_7 = arith.constant 0 : index
    %c0_8 = arith.constant 0 : index
    %c1 = arith.constant 1 : index
    %3 = vector.load %arg1[%c0_7, %c0_8, %c1] : memref<1x16x96xf32, #tpu.memory_space<vmem>>, vector<1x16x1xf32>
    %4 = tpu.concatenate %2, %3 in 2 : vector<1x16x1xf32>, vector<1x16x1xf32> -> vector<1x16x2xf32>
    %c0_9 = arith.constant 0 : index
    %c2_10 = arith.constant 2 : index
    %c0_11 = arith.constant 0 : index
    %5 = vector.load %arg3[%c0_9, %c2_10, %c0_11] : memref<1x20x120xf32, #tpu.memory_space<vmem>>, vector<1x16x2xf32>
    tpu.vector_store %arg3[%c0_9, %c2_10, %c0_11], %4 {strides = array<i32>} : memref<1x20x120xf32, #tpu.memory_space<vmem>>, vector<1x16x2xf32>,
    %c0_12 = arith.constant 0 : index
    %c0_13 = arith.constant 0 : index
    %c14 = arith.constant 14 : index
    %6 = vector.load %arg1[%c0_12, %c0_13, %c14] : memref<1x16x96xf32, #tpu.memory_space<vmem>>, vector<1x16x1xf32>
    %c0_14 = arith.constant 0 : index
    %c0_15 = arith.constant 0 : index
    %c13 = arith.constant 13 : index
    %7 = vector.load %arg1[%c0_14, %c0_15, %c13] : memref<1x16x96xf32, #tpu.memory_space<vmem>>, vector<1x16x1xf32>
    %8 = tpu.concatenate %6, %7 in 2 : vector<1x16x1xf32>, vector<1x16x1xf32> -> vector<1x16x2xf32>
    %c0_16 = arith.constant 0 : index
    %c2_17 = arith.constant 2 : index
    %c18 = arith.constant 18 : index
    %9 = vector.load %arg3[%c0_16, %c2_17, %c18] : memref<1x20x120xf32, #tpu.memory_space<vmem>>, vector<1x16x2xf32>
    tpu.vector_store %arg3[%c0_16, %c2_17, %c18], %8 {strides = array<i32>} : memref<1x20x120xf32, #tpu.memory_space<vmem>>, vector<1x16x2xf32>,
    %c0_18 = arith.constant 0 : index
    %c0_19 = arith.constant 0 : index
    %c16 = arith.constant 16 : index
    %10 = vector.load %arg1[%c0_18, %c0_19, %c16] : memref<1x16x96xf32, #tpu.memory_space<vmem>>, vector<1x16x16xf32>
    %c0_20 = arith.constant 0 : index
    %c2_21 = arith.constant 2 : index
    %c22 = arith.constant 22 : index
    %11 = vector.load %arg3[%c0_20, %c2_21, %c22] : memref<1x20x120xf32, #tpu.memory_space<vmem>>, vector<1x16x16xf32>
    tpu.vector_store %arg3[%c0_20, %c2_21, %c22], %10 {strides = array<i32>} : memref<1x20x120xf32, #tpu.memory_space<vmem>>, vector<1x16x16xf32>,
    %c0_22 = arith.constant 0 : index
    %c0_23 = arith.constant 0 : index
    %c18_24 = arith.constant 18 : index
    %12 = vector.load %arg1[%c0_22, %c0_23, %c18_24] : memref<1x16x96xf32, #tpu.memory_space<vmem>>, vector<1x16x1xf32>
    %c0_25 = arith.constant 0 : index
    %c0_26 = arith.constant 0 : index
    %c17 = arith.constant 17 : index
    %13 = vector.load %arg1[%c0_25, %c0_26, %c17] : memref<1x16x96xf32, #tpu.memory_space<vmem>>, vector<1x16x1xf32>
    %14 = tpu.concatenate %12, %13 in 2 : vector<1x16x1xf32>, vector<1x16x1xf32> -> vector<1x16x2xf32>
    %c0_27 = arith.constant 0 : index
    %c2_28 = arith.constant 2 : index
    %c20 = arith.constant 20 : index
    %15 = vector.load %arg3[%c0_27, %c2_28, %c20] : memref<1x20x120xf32, #tpu.memory_space<vmem>>, vector<1x16x2xf32>
    tpu.vector_store %arg3[%c0_27, %c2_28, %c20], %14 {strides = array<i32>} : memref<1x20x120xf32, #tpu.memory_space<vmem>>, vector<1x16x2xf32>,
    %c0_29 = arith.constant 0 : index
    %c0_30 = arith.constant 0 : index
    %c30 = arith.constant 30 : index
    %16 = vector.load %arg1[%c0_29, %c0_30, %c30] : memref<1x16x96xf32, #tpu.memory_space<vmem>>, vector<1x16x1xf32>
    %c0_31 = arith.constant 0 : index
    %c0_32 = arith.constant 0 : index
    %c29 = arith.constant 29 : index
    %17 = vector.load %arg1[%c0_31, %c0_32, %c29] : memref<1x16x96xf32, #tpu.memory_space<vmem>>, vector<1x16x1xf32>
    %18 = tpu.concatenate %16, %17 in 2 : vector<1x16x1xf32>, vector<1x16x1xf32> -> vector<1x16x2xf32>
    %c0_33 = arith.constant 0 : index
    %c2_34 = arith.constant 2 : index
    %c38 = arith.constant 38 : index
    %19 = vector.load %arg3[%c0_33, %c2_34, %c38] : memref<1x20x120xf32, #tpu.memory_space<vmem>>, vector<1x16x2xf32>
    tpu.vector_store %arg3[%c0_33, %c2_34, %c38], %18 {strides = array<i32>} : memref<1x20x120xf32, #tpu.memory_space<vmem>>, vector<1x16x2xf32>,
    %c0_35 = arith.constant 0 : index
    %c0_36 = arith.constant 0 : index
    %c32 = arith.constant 32 : index
    %20 = vector.load %arg1[%c0_35, %c0_36, %c32] : memref<1x16x96xf32, #tpu.memory_space<vmem>>, vector<1x16x16xf32>
    %c0_37 = arith.constant 0 : index
    %c2_38 = arith.constant 2 : index
    %c42 = arith.constant 42 : index
    %21 = vector.load %arg3[%c0_37, %c2_38, %c42] : memref<1x20x120xf32, #tpu.memory_space<vmem>>, vector<1x16x16xf32>
    tpu.vector_store %arg3[%c0_37, %c2_38, %c42], %20 {strides = array<i32>} : memref<1x20x120xf32, #tpu.memory_space<vmem>>, vector<1x16x16xf32>,
    %c0_39 = arith.constant 0 : index
    %c0_40 = arith.constant 0 : index
    %c34 = arith.constant 34 : index
    %22 = vector.load %arg1[%c0_39, %c0_40, %c34] : memref<1x16x96xf32, #tpu.memory_space<vmem>>, vector<1x16x1xf32>
    %c0_41 = arith.constant 0 : index
    %c0_42 = arith.constant 0 : index
    %c33 = arith.constant 33 : index
    %23 = vector.load %arg1[%c0_41, %c0_42, %c33] : memref<1x16x96xf32, #tpu.memory_space<vmem>>, vector<1x16x1xf32>
    %24 = tpu.concatenate %22, %23 in 2 : vector<1x16x1xf32>, vector<1x16x1xf32> -> vector<1x16x2xf32>
    %c0_43 = arith.constant 0 : index
    %c2_44 = arith.constant 2 : index
    %c40 = arith.constant 40 : index
    %25 = vector.load %arg3[%c0_43, %c2_44, %c40] : memref<1x20x120xf32, #tpu.memory_space<vmem>>, vector<1x16x2xf32>
    tpu.vector_store %arg3[%c0_43, %c2_44, %c40], %24 {strides = array<i32>} : memref<1x20x120xf32, #tpu.memory_space<vmem>>, vector<1x16x2xf32>,
    %c0_45 = arith.constant 0 : index
    %c0_46 = arith.constant 0 : index
    %c46 = arith.constant 46 : index
    %26 = vector.load %arg1[%c0_45, %c0_46, %c46] : memref<1x16x96xf32, #tpu.memory_space<vmem>>, vector<1x16x1xf32>
    %c0_47 = arith.constant 0 : index
    %c0_48 = arith.constant 0 : index
    %c45 = arith.constant 45 : index
    %27 = vector.load %arg1[%c0_47, %c0_48, %c45] : memref<1x16x96xf32, #tpu.memory_space<vmem>>, vector<1x16x1xf32>
    %28 = tpu.concatenate %26, %27 in 2 : vector<1x16x1xf32>, vector<1x16x1xf32> -> vector<1x16x2xf32>
    %c0_49 = arith.constant 0 : index
    %c2_50 = arith.constant 2 : index
    %c58 = arith.constant 58 : index
    %29 = vector.load %arg3[%c0_49, %c2_50, %c58] : memref<1x20x120xf32, #tpu.memory_space<vmem>>, vector<1x16x2xf32>
    tpu.vector_store %arg3[%c0_49, %c2_50, %c58], %28 {strides = array<i32>} : memref<1x20x120xf32, #tpu.memory_space<vmem>>, vector<1x16x2xf32>,
    %c0_51 = arith.constant 0 : index
    %c0_52 = arith.constant 0 : index
    %c48 = arith.constant 48 : index
    %30 = vector.load %arg1[%c0_51, %c0_52, %c48] : memref<1x16x96xf32, #tpu.memory_space<vmem>>, vector<1x16x16xf32>
    %c0_53 = arith.constant 0 : index
    %c2_54 = arith.constant 2 : index
    %c62 = arith.constant 62 : index
    %31 = vector.load %arg3[%c0_53, %c2_54, %c62] : memref<1x20x120xf32, #tpu.memory_space<vmem>>, vector<1x16x16xf32>
    tpu.vector_store %arg3[%c0_53, %c2_54, %c62], %30 {strides = array<i32>} : memref<1x20x120xf32, #tpu.memory_space<vmem>>, vector<1x16x16xf32>,
    %c0_55 = arith.constant 0 : index
    %c0_56 = arith.constant 0 : index
    %c50 = arith.constant 50 : index
    %32 = vector.load %arg1[%c0_55, %c0_56, %c50] : memref<1x16x96xf32, #tpu.memory_space<vmem>>, vector<1x16x1xf32>
    %c0_57 = arith.constant 0 : index
    %c0_58 = arith.constant 0 : index
    %c49 = arith.constant 49 : index
    %33 = vector.load %arg1[%c0_57, %c0_58, %c49] : memref<1x16x96xf32, #tpu.memory_space<vmem>>, vector<1x16x1xf32>
    %34 = tpu.concatenate %32, %33 in 2 : vector<1x16x1xf32>, vector<1x16x1xf32> -> vector<1x16x2xf32>
    %c0_59 = arith.constant 0 : index
    %c2_60 = arith.constant 2 : index
    %c60 = arith.constant 60 : index
    %35 = vector.load %arg3[%c0_59, %c2_60, %c60] : memref<1x20x120xf32, #tpu.memory_space<vmem>>, vector<1x16x2xf32>
    tpu.vector_store %arg3[%c0_59, %c2_60, %c60], %34 {strides = array<i32>} : memref<1x20x120xf32, #tpu.memory_space<vmem>>, vector<1x16x2xf32>,
    %c0_61 = arith.constant 0 : index
    %c0_62 = arith.constant 0 : index
    %c62_63 = arith.constant 62 : index
    %36 = vector.load %arg1[%c0_61, %c0_62, %c62_63] : memref<1x16x96xf32, #tpu.memory_space<vmem>>, vector<1x16x1xf32>
    %c0_64 = arith.constant 0 : index
    %c0_65 = arith.constant 0 : index
    %c61 = arith.constant 61 : index
    %37 = vector.load %arg1[%c0_64, %c0_65, %c61] : memref<1x16x96xf32, #tpu.memory_space<vmem>>, vector<1x16x1xf32>
    %38 = tpu.concatenate %36, %37 in 2 : vector<1x16x1xf32>, vector<1x16x1xf32> -> vector<1x16x2xf32>
    %c0_66 = arith.constant 0 : index
    %c2_67 = arith.constant 2 : index
    %c78 = arith.constant 78 : index
    %39 = vector.load %arg3[%c0_66, %c2_67, %c78] : memref<1x20x120xf32, #tpu.memory_space<vmem>>, vector<1x16x2xf32>
    tpu.vector_store %arg3[%c0_66, %c2_67, %c78], %38 {strides = array<i32>} : memref<1x20x120xf32, #tpu.memory_space<vmem>>, vector<1x16x2xf32>,
    %c0_68 = arith.constant 0 : index
    %c0_69 = arith.constant 0 : index
    %c64 = arith.constant 64 : index
    %40 = vector.load %arg1[%c0_68, %c0_69, %c64] : memref<1x16x96xf32, #tpu.memory_space<vmem>>, vector<1x16x16xf32>
    %c0_70 = arith.constant 0 : index
    %c2_71 = arith.constant 2 : index
    %c82 = arith.constant 82 : index
    %41 = vector.load %arg3[%c0_70, %c2_71, %c82] : memref<1x20x120xf32, #tpu.memory_space<vmem>>, vector<1x16x16xf32>
    tpu.vector_store %arg3[%c0_70, %c2_71, %c82], %40 {strides = array<i32>} : memref<1x20x120xf32, #tpu.memory_space<vmem>>, vector<1x16x16xf32>,
    %c0_72 = arith.constant 0 : index
    %c0_73 = arith.constant 0 : index
    %c66 = arith.constant 66 : index
    %42 = vector.load %arg1[%c0_72, %c0_73, %c66] : memref<1x16x96xf32, #tpu.memory_space<vmem>>, vector<1x16x1xf32>
    %c0_74 = arith.constant 0 : index
    %c0_75 = arith.constant 0 : index
    %c65 = arith.constant 65 : index
    %43 = vector.load %arg1[%c0_74, %c0_75, %c65] : memref<1x16x96xf32, #tpu.memory_space<vmem>>, vector<1x16x1xf32>
    %44 = tpu.concatenate %42, %43 in 2 : vector<1x16x1xf32>, vector<1x16x1xf32> -> vector<1x16x2xf32>
    %c0_76 = arith.constant 0 : index
    %c2_77 = arith.constant 2 : index
    %c80 = arith.constant 80 : index
    %45 = vector.load %arg3[%c0_76, %c2_77, %c80] : memref<1x20x120xf32, #tpu.memory_space<vmem>>, vector<1x16x2xf32>
    tpu.vector_store %arg3[%c0_76, %c2_77, %c80], %44 {strides = array<i32>} : memref<1x20x120xf32, #tpu.memory_space<vmem>>, vector<1x16x2xf32>,
    %c0_78 = arith.constant 0 : index
    %c0_79 = arith.constant 0 : index
    %c78_80 = arith.constant 78 : index
    %46 = vector.load %arg1[%c0_78, %c0_79, %c78_80] : memref<1x16x96xf32, #tpu.memory_space<vmem>>, vector<1x16x1xf32>
    %c0_81 = arith.constant 0 : index
    %c0_82 = arith.constant 0 : index
    %c77 = arith.constant 77 : index
    %47 = vector.load %arg1[%c0_81, %c0_82, %c77] : memref<1x16x96xf32, #tpu.memory_space<vmem>>, vector<1x16x1xf32>
    %48 = tpu.concatenate %46, %47 in 2 : vector<1x16x1xf32>, vector<1x16x1xf32> -> vector<1x16x2xf32>
    %c0_83 = arith.constant 0 : index
    %c2_84 = arith.constant 2 : index
    %c98 = arith.constant 98 : index
    %49 = vector.load %arg3[%c0_83, %c2_84, %c98] : memref<1x20x120xf32, #tpu.memory_space<vmem>>, vector<1x16x2xf32>
    tpu.vector_store %arg3[%c0_83, %c2_84, %c98], %48 {strides = array<i32>} : memref<1x20x120xf32, #tpu.memory_space<vmem>>, vector<1x16x2xf32>,
    %c0_85 = arith.constant 0 : index
    %c0_86 = arith.constant 0 : index
    %c80_87 = arith.constant 80 : index
    %50 = vector.load %arg1[%c0_85, %c0_86, %c80_87] : memref<1x16x96xf32, #tpu.memory_space<vmem>>, vector<1x16x16xf32>
    %c0_88 = arith.constant 0 : index
    %c2_89 = arith.constant 2 : index
    %c102 = arith.constant 102 : index
    %51 = vector.load %arg3[%c0_88, %c2_89, %c102] : memref<1x20x120xf32, #tpu.memory_space<vmem>>, vector<1x16x16xf32>
    tpu.vector_store %arg3[%c0_88, %c2_89, %c102], %50 {strides = array<i32>} : memref<1x20x120xf32, #tpu.memory_space<vmem>>, vector<1x16x16xf32>,
    %c0_90 = arith.constant 0 : index
    %c0_91 = arith.constant 0 : index
    %c82_92 = arith.constant 82 : index
    %52 = vector.load %arg1[%c0_90, %c0_91, %c82_92] : memref<1x16x96xf32, #tpu.memory_space<vmem>>, vector<1x16x1xf32>
    %c0_93 = arith.constant 0 : index
    %c0_94 = arith.constant 0 : index
    %c81 = arith.constant 81 : index
    %53 = vector.load %arg1[%c0_93, %c0_94, %c81] : memref<1x16x96xf32, #tpu.memory_space<vmem>>, vector<1x16x1xf32>
    %54 = tpu.concatenate %52, %53 in 2 : vector<1x16x1xf32>, vector<1x16x1xf32> -> vector<1x16x2xf32>
    %c0_95 = arith.constant 0 : index
    %c2_96 = arith.constant 2 : index
    %c100 = arith.constant 100 : index
    %55 = vector.load %arg3[%c0_95, %c2_96, %c100] : memref<1x20x120xf32, #tpu.memory_space<vmem>>, vector<1x16x2xf32>
    tpu.vector_store %arg3[%c0_95, %c2_96, %c100], %54 {strides = array<i32>} : memref<1x20x120xf32, #tpu.memory_space<vmem>>, vector<1x16x2xf32>,
    %c0_97 = arith.constant 0 : index
    %c0_98 = arith.constant 0 : index
    %c94 = arith.constant 94 : index
    %56 = vector.load %arg1[%c0_97, %c0_98, %c94] : memref<1x16x96xf32, #tpu.memory_space<vmem>>, vector<1x16x1xf32>
    %c0_99 = arith.constant 0 : index
    %c0_100 = arith.constant 0 : index
    %c93 = arith.constant 93 : index
    %57 = vector.load %arg1[%c0_99, %c0_100, %c93] : memref<1x16x96xf32, #tpu.memory_space<vmem>>, vector<1x16x1xf32>
    %58 = tpu.concatenate %56, %57 in 2 : vector<1x16x1xf32>, vector<1x16x1xf32> -> vector<1x16x2xf32>
    %c0_101 = arith.constant 0 : index
    %c2_102 = arith.constant 2 : index
    %c118 = arith.constant 118 : index
    %59 = vector.load %arg3[%c0_101, %c2_102, %c118] : memref<1x20x120xf32, #tpu.memory_space<vmem>>, vector<1x16x2xf32>
    tpu.vector_store %arg3[%c0_101, %c2_102, %c118], %58 {strides = array<i32>} : memref<1x20x120xf32, #tpu.memory_space<vmem>>, vector<1x16x2xf32>,
    %c0_103 = arith.constant 0 : index
    %c4 = arith.constant 4 : index
    %c0_104 = arith.constant 0 : index
    %60 = vector.load %arg3[%c0_103, %c4, %c0_104] : memref<1x20x120xf32, #tpu.memory_space<vmem>>, vector<1x1x120xf32>
    %c0_105 = arith.constant 0 : index
    %c3 = arith.constant 3 : index
    %c0_106 = arith.constant 0 : index
    %61 = vector.load %arg3[%c0_105, %c3, %c0_106] : memref<1x20x120xf32, #tpu.memory_space<vmem>>, vector<1x1x120xf32>
    %62 = tpu.concatenate %60, %61 in 1 : vector<1x1x120xf32>, vector<1x1x120xf32> -> vector<1x2x120xf32>
    %c0_107 = arith.constant 0 : index
    %c0_108 = arith.constant 0 : index
    %c0_109 = arith.constant 0 : index
    %63 = vector.load %arg3[%c0_107, %c0_108, %c0_109] : memref<1x20x120xf32, #tpu.memory_space<vmem>>, vector<1x2x120xf32>
    tpu.vector_store %arg3[%c0_107, %c0_108, %c0_109], %62 {strides = array<i32>} : memref<1x20x120xf32, #tpu.memory_space<vmem>>, vector<1x2x120xf32>,
    %c0_110 = arith.constant 0 : index
    %c16_111 = arith.constant 16 : index
    %c0_112 = arith.constant 0 : index
    %64 = vector.load %arg3[%c0_110, %c16_111, %c0_112] : memref<1x20x120xf32, #tpu.memory_space<vmem>>, vector<1x1x120xf32>
    %c0_113 = arith.constant 0 : index
    %c15 = arith.constant 15 : index
    %c0_114 = arith.constant 0 : index
    %65 = vector.load %arg3[%c0_113, %c15, %c0_114] : memref<1x20x120xf32, #tpu.memory_space<vmem>>, vector<1x1x120xf32>
    %66 = tpu.concatenate %64, %65 in 1 : vector<1x1x120xf32>, vector<1x1x120xf32> -> vector<1x2x120xf32>
    %c0_115 = arith.constant 0 : index
    %c18_116 = arith.constant 18 : index
    %c0_117 = arith.constant 0 : index
    %67 = vector.load %arg3[%c0_115, %c18_116, %c0_117] : memref<1x20x120xf32, #tpu.memory_space<vmem>>, vector<1x2x120xf32>
    tpu.vector_store %arg3[%c0_115, %c18_116, %c0_117], %66 {strides = array<i32>} : memref<1x20x120xf32, #tpu.memory_space<vmem>>, vector<1x2x120xf32>,
    %cst = arith.constant 0.000000e+00 : f32
    %68 = vector.broadcast %cst : f32 to vector<8x116xf32>
    %c0_118 = arith.constant 0 : index
    %c0_119 = arith.constant 0 : index
    %c0_120 = arith.constant 0 : index
    %69 = vector.load %arg3[%c0_118, %c0_119, %c0_120] : memref<1x20x120xf32, #tpu.memory_space<vmem>>, vector<1x12x116xf32>
    %70 = vector.shape_cast %69 : vector<1x12x116xf32> to vector<12x116xf32>
    %71 = vector.extract_strided_slice %70 {offsets = [0, 0], sizes = [8, 116], strides = [1, 1]} : vector<12x116xf32> to vector<8x116xf32>
    %cst_121 = arith.constant 0.00873864255 : f32
    %72 = vector.broadcast %cst_121 : f32 to vector<8x116xf32>
    %73 = arith.mulf %72, %71 : vector<8x116xf32>
    %74 = arith.addf %68, %73 : vector<8x116xf32>
    %75 = vector.extract_strided_slice %70 {offsets = [1, 0], sizes = [8, 116], strides = [1, 1]} : vector<12x116xf32> to vector<8x116xf32>
    %cst_122 = arith.constant 0.0157194156 : f32
    %76 = vector.broadcast %cst_122 : f32 to vector<8x116xf32>
    %77 = arith.mulf %76, %75 : vector<8x116xf32>
    %78 = arith.addf %74, %77 : vector<8x116xf32>
    %79 = vector.extract_strided_slice %70 {offsets = [2, 0], sizes = [8, 116], strides = [1, 1]} : vector<12x116xf32> to vector<8x116xf32>
    %cst_123 = arith.constant 0.0201577786 : f32
    %80 = vector.broadcast %cst_123 : f32 to vector<8x116xf32>
    %81 = arith.mulf %80, %79 : vector<8x116xf32>
    %82 = arith.addf %78, %81 : vector<8x116xf32>
    %83 = vector.extract_strided_slice %70 {offsets = [3, 0], sizes = [8, 116], strides = [1, 1]} : vector<12x116xf32> to vector<8x116xf32>
    %cst_124 = arith.constant 0.0157194156 : f32
    %84 = vector.broadcast %cst_124 : f32 to vector<8x116xf32>
    %85 = arith.mulf %84, %83 : vector<8x116xf32>
    %86 = arith.addf %82, %85 : vector<8x116xf32>
    %87 = vector.extract_strided_slice %70 {offsets = [4, 0], sizes = [8, 116], strides = [1, 1]} : vector<12x116xf32> to vector<8x116xf32>
    %cst_125 = arith.constant 0.00873864255 : f32
    %88 = vector.broadcast %cst_125 : f32 to vector<8x116xf32>
    %89 = arith.mulf %88, %87 : vector<8x116xf32>
    %90 = arith.addf %86, %89 : vector<8x116xf32>
    %c0_126 = arith.constant 0 : index
    %c0_127 = arith.constant 0 : index
    %c1_128 = arith.constant 1 : index
    %91 = vector.load %arg3[%c0_126, %c0_127, %c1_128] : memref<1x20x120xf32, #tpu.memory_space<vmem>>, vector<1x12x116xf32>
    %92 = vector.shape_cast %91 : vector<1x12x116xf32> to vector<12x116xf32>
    %93 = vector.extract_strided_slice %92 {offsets = [0, 0], sizes = [8, 116], strides = [1, 1]} : vector<12x116xf32> to vector<8x116xf32>
    %cst_129 = arith.constant 0.0157194156 : f32
    %94 = vector.broadcast %cst_129 : f32 to vector<8x116xf32>
    %95 = arith.mulf %94, %93 : vector<8x116xf32>
    %96 = arith.addf %90, %95 : vector<8x116xf32>
    %97 = vector.extract_strided_slice %92 {offsets = [1, 0], sizes = [8, 116], strides = [1, 1]} : vector<12x116xf32> to vector<8x116xf32>
    %cst_130 = arith.constant 0.0400598757 : f32
    %98 = vector.broadcast %cst_130 : f32 to vector<8x116xf32>
    %99 = arith.mulf %98, %97 : vector<8x116xf32>
    %100 = arith.addf %96, %99 : vector<8x116xf32>
    %101 = vector.extract_strided_slice %92 {offsets = [2, 0], sizes = [8, 116], strides = [1, 1]} : vector<12x116xf32> to vector<8x116xf32>
    %cst_131 = arith.constant 0.0792725533 : f32
    %102 = vector.broadcast %cst_131 : f32 to vector<8x116xf32>
    %103 = arith.mulf %102, %101 : vector<8x116xf32>
    %104 = arith.addf %100, %103 : vector<8x116xf32>
    %105 = vector.extract_strided_slice %92 {offsets = [3, 0], sizes = [8, 116], strides = [1, 1]} : vector<12x116xf32> to vector<8x116xf32>
    %cst_132 = arith.constant 0.0400598757 : f32
    %106 = vector.broadcast %cst_132 : f32 to vector<8x116xf32>
    %107 = arith.mulf %106, %105 : vector<8x116xf32>
    %108 = arith.addf %104, %107 : vector<8x116xf32>
    %109 = vector.extract_strided_slice %92 {offsets = [4, 0], sizes = [8, 116], strides = [1, 1]} : vector<12x116xf32> to vector<8x116xf32>
    %cst_133 = arith.constant 0.0157194156 : f32
    %110 = vector.broadcast %cst_133 : f32 to vector<8x116xf32>
    %111 = arith.mulf %110, %109 : vector<8x116xf32>
    %112 = arith.addf %108, %111 : vector<8x116xf32>
    %c0_134 = arith.constant 0 : index
    %c0_135 = arith.constant 0 : index
    %c2_136 = arith.constant 2 : index
    %113 = vector.load %arg3[%c0_134, %c0_135, %c2_136] : memref<1x20x120xf32, #tpu.memory_space<vmem>>, vector<1x12x116xf32>
    %114 = vector.shape_cast %113 : vector<1x12x116xf32> to vector<12x116xf32>
    %115 = vector.extract_strided_slice %114 {offsets = [0, 0], sizes = [8, 116], strides = [1, 1]} : vector<12x116xf32> to vector<8x116xf32>
    %cst_137 = arith.constant 0.0201577786 : f32
    %116 = vector.broadcast %cst_137 : f32 to vector<8x116xf32>
    %117 = arith.mulf %116, %115 : vector<8x116xf32>
    %118 = arith.addf %112, %117 : vector<8x116xf32>
    %119 = vector.extract_strided_slice %114 {offsets = [1, 0], sizes = [8, 116], strides = [1, 1]} : vector<12x116xf32> to vector<8x116xf32>
    %cst_138 = arith.constant 0.0792725533 : f32
    %120 = vector.broadcast %cst_138 : f32 to vector<8x116xf32>
    %121 = arith.mulf %120, %119 : vector<8x116xf32>
    %122 = arith.addf %118, %121 : vector<8x116xf32>
    %123 = vector.extract_strided_slice %114 {offsets = [2, 0], sizes = [8, 116], strides = [1, 1]} : vector<12x116xf32> to vector<8x116xf32>
    %cst_139 = arith.constant 0.281329274 : f32
    %124 = vector.broadcast %cst_139 : f32 to vector<8x116xf32>
    %125 = arith.mulf %124, %123 : vector<8x116xf32>
    %126 = arith.addf %122, %125 : vector<8x116xf32>
    %127 = vector.extract_strided_slice %114 {offsets = [3, 0], sizes = [8, 116], strides = [1, 1]} : vector<12x116xf32> to vector<8x116xf32>
    %cst_140 = arith.constant 0.0792725533 : f32
    %128 = vector.broadcast %cst_140 : f32 to vector<8x116xf32>
    %129 = arith.mulf %128, %127 : vector<8x116xf32>
    %130 = arith.addf %126, %129 : vector<8x116xf32>
    %131 = vector.extract_strided_slice %114 {offsets = [4, 0], sizes = [8, 116], strides = [1, 1]} : vector<12x116xf32> to vector<8x116xf32>
    %cst_141 = arith.constant 0.0201577786 : f32
    %132 = vector.broadcast %cst_141 : f32 to vector<8x116xf32>
    %133 = arith.mulf %132, %131 : vector<8x116xf32>
    %134 = arith.addf %130, %133 : vector<8x116xf32>
    %c0_142 = arith.constant 0 : index
    %c0_143 = arith.constant 0 : index
    %c3_144 = arith.constant 3 : index
    %135 = vector.load %arg3[%c0_142, %c0_143, %c3_144] : memref<1x20x120xf32, #tpu.memory_space<vmem>>, vector<1x12x116xf32>
    %136 = vector.shape_cast %135 : vector<1x12x116xf32> to vector<12x116xf32>
    %137 = vector.extract_strided_slice %136 {offsets = [0, 0], sizes = [8, 116], strides = [1, 1]} : vector<12x116xf32> to vector<8x116xf32>
    %cst_145 = arith.constant 0.0157194156 : f32
    %138 = vector.broadcast %cst_145 : f32 to vector<8x116xf32>
    %139 = arith.mulf %138, %137 : vector<8x116xf32>
    %140 = arith.addf %134, %139 : vector<8x116xf32>
    %141 = vector.extract_strided_slice %136 {offsets = [1, 0], sizes = [8, 116], strides = [1, 1]} : vector<12x116xf32> to vector<8x116xf32>
    %cst_146 = arith.constant 0.0400598757 : f32
    %142 = vector.broadcast %cst_146 : f32 to vector<8x116xf32>
    %143 = arith.mulf %142, %141 : vector<8x116xf32>
    %144 = arith.addf %140, %143 : vector<8x116xf32>
    %145 = vector.extract_strided_slice %136 {offsets = [2, 0], sizes = [8, 116], strides = [1, 1]} : vector<12x116xf32> to vector<8x116xf32>
    %cst_147 = arith.constant 0.0792725533 : f32
    %146 = vector.broadcast %cst_147 : f32 to vector<8x116xf32>
    %147 = arith.mulf %146, %145 : vector<8x116xf32>
    %148 = arith.addf %144, %147 : vector<8x116xf32>
    %149 = vector.extract_strided_slice %136 {offsets = [3, 0], sizes = [8, 116], strides = [1, 1]} : vector<12x116xf32> to vector<8x116xf32>
    %cst_148 = arith.constant 0.0400598757 : f32
    %150 = vector.broadcast %cst_148 : f32 to vector<8x116xf32>
    %151 = arith.mulf %150, %149 : vector<8x116xf32>
    %152 = arith.addf %148, %151 : vector<8x116xf32>
    %153 = vector.extract_strided_slice %136 {offsets = [4, 0], sizes = [8, 116], strides = [1, 1]} : vector<12x116xf32> to vector<8x116xf32>
    %cst_149 = arith.constant 0.0157194156 : f32
    %154 = vector.broadcast %cst_149 : f32 to vector<8x116xf32>
    %155 = arith.mulf %154, %153 : vector<8x116xf32>
    %156 = arith.addf %152, %155 : vector<8x116xf32>
    %c0_150 = arith.constant 0 : index
    %c0_151 = arith.constant 0 : index
    %c4_152 = arith.constant 4 : index
    %157 = vector.load %arg3[%c0_150, %c0_151, %c4_152] : memref<1x20x120xf32, #tpu.memory_space<vmem>>, vector<1x12x116xf32>
    %158 = vector.shape_cast %157 : vector<1x12x116xf32> to vector<12x116xf32>
    %159 = vector.extract_strided_slice %158 {offsets = [0, 0], sizes = [8, 116], strides = [1, 1]} : vector<12x116xf32> to vector<8x116xf32>
    %cst_153 = arith.constant 0.00873864255 : f32
    %160 = vector.broadcast %cst_153 : f32 to vector<8x116xf32>
    %161 = arith.mulf %160, %159 : vector<8x116xf32>
    %162 = arith.addf %156, %161 : vector<8x116xf32>
    %163 = vector.extract_strided_slice %158 {offsets = [1, 0], sizes = [8, 116], strides = [1, 1]} : vector<12x116xf32> to vector<8x116xf32>
    %cst_154 = arith.constant 0.0157194156 : f32
    %164 = vector.broadcast %cst_154 : f32 to vector<8x116xf32>
    %165 = arith.mulf %164, %163 : vector<8x116xf32>
    %166 = arith.addf %162, %165 : vector<8x116xf32>
    %167 = vector.extract_strided_slice %158 {offsets = [2, 0], sizes = [8, 116], strides = [1, 1]} : vector<12x116xf32> to vector<8x116xf32>
    %cst_155 = arith.constant 0.0201577786 : f32
    %168 = vector.broadcast %cst_155 : f32 to vector<8x116xf32>
    %169 = arith.mulf %168, %167 : vector<8x116xf32>
    %170 = arith.addf %166, %169 : vector<8x116xf32>
    %171 = vector.extract_strided_slice %158 {offsets = [3, 0], sizes = [8, 116], strides = [1, 1]} : vector<12x116xf32> to vector<8x116xf32>
    %cst_156 = arith.constant 0.0157194156 : f32
    %172 = vector.broadcast %cst_156 : f32 to vector<8x116xf32>
    %173 = arith.mulf %172, %171 : vector<8x116xf32>
    %174 = arith.addf %170, %173 : vector<8x116xf32>
    %175 = vector.extract_strided_slice %158 {offsets = [4, 0], sizes = [8, 116], strides = [1, 1]} : vector<12x116xf32> to vector<8x116xf32>
    %cst_157 = arith.constant 0.00873864255 : f32
    %176 = vector.broadcast %cst_157 : f32 to vector<8x116xf32>
    %177 = arith.mulf %176, %175 : vector<8x116xf32>
    %178 = arith.addf %174, %177 : vector<8x116xf32>
    %c0_158 = arith.constant 0 : index
    %c0_159 = arith.constant 0 : index
    %c0_160 = arith.constant 0 : index
    %179 = vector.load %arg2[%c0_158, %c0_159, %c0_160] : memref<1x16x116xf32, #tpu.memory_space<vmem>>, vector<1x8x116xf32>
    %180 = vector.shape_cast %179 : vector<1x8x116xf32> to vector<8x116xf32>
    %181 = vector.shape_cast %178 : vector<8x116xf32> to vector<1x8x116xf32>
    tpu.vector_store %arg2[%c0_158, %c0_159, %c0_160], %181 {strides = array<i32>} : memref<1x16x116xf32, #tpu.memory_space<vmem>>, vector<1x8x116xf32>,
    %cst_161 = arith.constant 0.000000e+00 : f32
    %182 = vector.broadcast %cst_161 : f32 to vector<8x116xf32>
    %c0_162 = arith.constant 0 : index
    %c8 = arith.constant 8 : index
    %c0_163 = arith.constant 0 : index
    %183 = vector.load %arg3[%c0_162, %c8, %c0_163] : memref<1x20x120xf32, #tpu.memory_space<vmem>>, vector<1x12x116xf32>
    %184 = vector.shape_cast %183 : vector<1x12x116xf32> to vector<12x116xf32>
    %185 = vector.extract_strided_slice %184 {offsets = [0, 0], sizes = [8, 116], strides = [1, 1]} : vector<12x116xf32> to vector<8x116xf32>
    %cst_164 = arith.constant 0.00873864255 : f32
    %186 = vector.broadcast %cst_164 : f32 to vector<8x116xf32>
    %187 = arith.mulf %186, %185 : vector<8x116xf32>
    %188 = arith.addf %182, %187 : vector<8x116xf32>
    %189 = vector.extract_strided_slice %184 {offsets = [1, 0], sizes = [8, 116], strides = [1, 1]} : vector<12x116xf32> to vector<8x116xf32>
    %cst_165 = arith.constant 0.0157194156 : f32
    %190 = vector.broadcast %cst_165 : f32 to vector<8x116xf32>
    %191 = arith.mulf %190, %189 : vector<8x116xf32>
    %192 = arith.addf %188, %191 : vector<8x116xf32>
    %193 = vector.extract_strided_slice %184 {offsets = [2, 0], sizes = [8, 116], strides = [1, 1]} : vector<12x116xf32> to vector<8x116xf32>
    %cst_166 = arith.constant 0.0201577786 : f32
    %194 = vector.broadcast %cst_166 : f32 to vector<8x116xf32>
    %195 = arith.mulf %194, %193 : vector<8x116xf32>
    %196 = arith.addf %192, %195 : vector<8x116xf32>
    %197 = vector.extract_strided_slice %184 {offsets = [3, 0], sizes = [8, 116], strides = [1, 1]} : vector<12x116xf32> to vector<8x116xf32>
    %cst_167 = arith.constant 0.0157194156 : f32
    %198 = vector.broadcast %cst_167 : f32 to vector<8x116xf32>
    %199 = arith.mulf %198, %197 : vector<8x116xf32>
    %200 = arith.addf %196, %199 : vector<8x116xf32>
    %201 = vector.extract_strided_slice %184 {offsets = [4, 0], sizes = [8, 116], strides = [1, 1]} : vector<12x116xf32> to vector<8x116xf32>
    %cst_168 = arith.constant 0.00873864255 : f32
    %202 = vector.broadcast %cst_168 : f32 to vector<8x116xf32>
    %203 = arith.mulf %202, %201 : vector<8x116xf32>
    %204 = arith.addf %200, %203 : vector<8x116xf32>
    %c0_169 = arith.constant 0 : index
    %c8_170 = arith.constant 8 : index
    %c1_171 = arith.constant 1 : index
    %205 = vector.load %arg3[%c0_169, %c8_170, %c1_171] : memref<1x20x120xf32, #tpu.memory_space<vmem>>, vector<1x12x116xf32>
    %206 = vector.shape_cast %205 : vector<1x12x116xf32> to vector<12x116xf32>
    %207 = vector.extract_strided_slice %206 {offsets = [0, 0], sizes = [8, 116], strides = [1, 1]} : vector<12x116xf32> to vector<8x116xf32>
    %cst_172 = arith.constant 0.0157194156 : f32
    %208 = vector.broadcast %cst_172 : f32 to vector<8x116xf32>
    %209 = arith.mulf %208, %207 : vector<8x116xf32>
    %210 = arith.addf %204, %209 : vector<8x116xf32>
    %211 = vector.extract_strided_slice %206 {offsets = [1, 0], sizes = [8, 116], strides = [1, 1]} : vector<12x116xf32> to vector<8x116xf32>
    %cst_173 = arith.constant 0.0400598757 : f32
    %212 = vector.broadcast %cst_173 : f32 to vector<8x116xf32>
    %213 = arith.mulf %212, %211 : vector<8x116xf32>
    %214 = arith.addf %210, %213 : vector<8x116xf32>
    %215 = vector.extract_strided_slice %206 {offsets = [2, 0], sizes = [8, 116], strides = [1, 1]} : vector<12x116xf32> to vector<8x116xf32>
    %cst_174 = arith.constant 0.0792725533 : f32
    %216 = vector.broadcast %cst_174 : f32 to vector<8x116xf32>
    %217 = arith.mulf %216, %215 : vector<8x116xf32>
    %218 = arith.addf %214, %217 : vector<8x116xf32>
    %219 = vector.extract_strided_slice %206 {offsets = [3, 0], sizes = [8, 116], strides = [1, 1]} : vector<12x116xf32> to vector<8x116xf32>
    %cst_175 = arith.constant 0.0400598757 : f32
    %220 = vector.broadcast %cst_175 : f32 to vector<8x116xf32>
    %221 = arith.mulf %220, %219 : vector<8x116xf32>
    %222 = arith.addf %218, %221 : vector<8x116xf32>
    %223 = vector.extract_strided_slice %206 {offsets = [4, 0], sizes = [8, 116], strides = [1, 1]} : vector<12x116xf32> to vector<8x116xf32>
    %cst_176 = arith.constant 0.0157194156 : f32
    %224 = vector.broadcast %cst_176 : f32 to vector<8x116xf32>
    %225 = arith.mulf %224, %223 : vector<8x116xf32>
    %226 = arith.addf %222, %225 : vector<8x116xf32>
    %c0_177 = arith.constant 0 : index
    %c8_178 = arith.constant 8 : index
    %c2_179 = arith.constant 2 : index
    %227 = vector.load %arg3[%c0_177, %c8_178, %c2_179] : memref<1x20x120xf32, #tpu.memory_space<vmem>>, vector<1x12x116xf32>
    %228 = vector.shape_cast %227 : vector<1x12x116xf32> to vector<12x116xf32>
    %229 = vector.extract_strided_slice %228 {offsets = [0, 0], sizes = [8, 116], strides = [1, 1]} : vector<12x116xf32> to vector<8x116xf32>
    %cst_180 = arith.constant 0.0201577786 : f32
    %230 = vector.broadcast %cst_180 : f32 to vector<8x116xf32>
    %231 = arith.mulf %230, %229 : vector<8x116xf32>
    %232 = arith.addf %226, %231 : vector<8x116xf32>
    %233 = vector.extract_strided_slice %228 {offsets = [1, 0], sizes = [8, 116], strides = [1, 1]} : vector<12x116xf32> to vector<8x116xf32>
    %cst_181 = arith.constant 0.0792725533 : f32
    %234 = vector.broadcast %cst_181 : f32 to vector<8x116xf32>
    %235 = arith.mulf %234, %233 : vector<8x116xf32>
    %236 = arith.addf %232, %235 : vector<8x116xf32>
    %237 = vector.extract_strided_slice %228 {offsets = [2, 0], sizes = [8, 116], strides = [1, 1]} : vector<12x116xf32> to vector<8x116xf32>
    %cst_182 = arith.constant 0.281329274 : f32
    %238 = vector.broadcast %cst_182 : f32 to vector<8x116xf32>
    %239 = arith.mulf %238, %237 : vector<8x116xf32>
    %240 = arith.addf %236, %239 : vector<8x116xf32>
    %241 = vector.extract_strided_slice %228 {offsets = [3, 0], sizes = [8, 116], strides = [1, 1]} : vector<12x116xf32> to vector<8x116xf32>
    %cst_183 = arith.constant 0.0792725533 : f32
    %242 = vector.broadcast %cst_183 : f32 to vector<8x116xf32>
    %243 = arith.mulf %242, %241 : vector<8x116xf32>
    %244 = arith.addf %240, %243 : vector<8x116xf32>
    %245 = vector.extract_strided_slice %228 {offsets = [4, 0], sizes = [8, 116], strides = [1, 1]} : vector<12x116xf32> to vector<8x116xf32>
    %cst_184 = arith.constant 0.0201577786 : f32
    %246 = vector.broadcast %cst_184 : f32 to vector<8x116xf32>
    %247 = arith.mulf %246, %245 : vector<8x116xf32>
    %248 = arith.addf %244, %247 : vector<8x116xf32>
    %c0_185 = arith.constant 0 : index
    %c8_186 = arith.constant 8 : index
    %c3_187 = arith.constant 3 : index
    %249 = vector.load %arg3[%c0_185, %c8_186, %c3_187] : memref<1x20x120xf32, #tpu.memory_space<vmem>>, vector<1x12x116xf32>
    %250 = vector.shape_cast %249 : vector<1x12x116xf32> to vector<12x116xf32>
    %251 = vector.extract_strided_slice %250 {offsets = [0, 0], sizes = [8, 116], strides = [1, 1]} : vector<12x116xf32> to vector<8x116xf32>
    %cst_188 = arith.constant 0.0157194156 : f32
    %252 = vector.broadcast %cst_188 : f32 to vector<8x116xf32>
    %253 = arith.mulf %252, %251 : vector<8x116xf32>
    %254 = arith.addf %248, %253 : vector<8x116xf32>
    %255 = vector.extract_strided_slice %250 {offsets = [1, 0], sizes = [8, 116], strides = [1, 1]} : vector<12x116xf32> to vector<8x116xf32>
    %cst_189 = arith.constant 0.0400598757 : f32
    %256 = vector.broadcast %cst_189 : f32 to vector<8x116xf32>
    %257 = arith.mulf %256, %255 : vector<8x116xf32>
    %258 = arith.addf %254, %257 : vector<8x116xf32>
    %259 = vector.extract_strided_slice %250 {offsets = [2, 0], sizes = [8, 116], strides = [1, 1]} : vector<12x116xf32> to vector<8x116xf32>
    %cst_190 = arith.constant 0.0792725533 : f32
    %260 = vector.broadcast %cst_190 : f32 to vector<8x116xf32>
    %261 = arith.mulf %260, %259 : vector<8x116xf32>
    %262 = arith.addf %258, %261 : vector<8x116xf32>
    %263 = vector.extract_strided_slice %250 {offsets = [3, 0], sizes = [8, 116], strides = [1, 1]} : vector<12x116xf32> to vector<8x116xf32>
    %cst_191 = arith.constant 0.0400598757 : f32
    %264 = vector.broadcast %cst_191 : f32 to vector<8x116xf32>
    %265 = arith.mulf %264, %263 : vector<8x116xf32>
    %266 = arith.addf %262, %265 : vector<8x116xf32>
    %267 = vector.extract_strided_slice %250 {offsets = [4, 0], sizes = [8, 116], strides = [1, 1]} : vector<12x116xf32> to vector<8x116xf32>
    %cst_192 = arith.constant 0.0157194156 : f32
    %268 = vector.broadcast %cst_192 : f32 to vector<8x116xf32>
    %269 = arith.mulf %268, %267 : vector<8x116xf32>
    %270 = arith.addf %266, %269 : vector<8x116xf32>
    %c0_193 = arith.constant 0 : index
    %c8_194 = arith.constant 8 : index
    %c4_195 = arith.constant 4 : index
    %271 = vector.load %arg3[%c0_193, %c8_194, %c4_195] : memref<1x20x120xf32, #tpu.memory_space<vmem>>, vector<1x12x116xf32>
    %272 = vector.shape_cast %271 : vector<1x12x116xf32> to vector<12x116xf32>
    %273 = vector.extract_strided_slice %272 {offsets = [0, 0], sizes = [8, 116], strides = [1, 1]} : vector<12x116xf32> to vector<8x116xf32>
    %cst_196 = arith.constant 0.00873864255 : f32
    %274 = vector.broadcast %cst_196 : f32 to vector<8x116xf32>
    %275 = arith.mulf %274, %273 : vector<8x116xf32>
    %276 = arith.addf %270, %275 : vector<8x116xf32>
    %277 = vector.extract_strided_slice %272 {offsets = [1, 0], sizes = [8, 116], strides = [1, 1]} : vector<12x116xf32> to vector<8x116xf32>
    %cst_197 = arith.constant 0.0157194156 : f32
    %278 = vector.broadcast %cst_197 : f32 to vector<8x116xf32>
    %279 = arith.mulf %278, %277 : vector<8x116xf32>
    %280 = arith.addf %276, %279 : vector<8x116xf32>
    %281 = vector.extract_strided_slice %272 {offsets = [2, 0], sizes = [8, 116], strides = [1, 1]} : vector<12x116xf32> to vector<8x116xf32>
    %cst_198 = arith.constant 0.0201577786 : f32
    %282 = vector.broadcast %cst_198 : f32 to vector<8x116xf32>
    %283 = arith.mulf %282, %281 : vector<8x116xf32>
    %284 = arith.addf %280, %283 : vector<8x116xf32>
    %285 = vector.extract_strided_slice %272 {offsets = [3, 0], sizes = [8, 116], strides = [1, 1]} : vector<12x116xf32> to vector<8x116xf32>
    %cst_199 = arith.constant 0.0157194156 : f32
    %286 = vector.broadcast %cst_199 : f32 to vector<8x116xf32>
    %287 = arith.mulf %286, %285 : vector<8x116xf32>
    %288 = arith.addf %284, %287 : vector<8x116xf32>
    %289 = vector.extract_strided_slice %272 {offsets = [4, 0], sizes = [8, 116], strides = [1, 1]} : vector<12x116xf32> to vector<8x116xf32>
    %cst_200 = arith.constant 0.00873864255 : f32
    %290 = vector.broadcast %cst_200 : f32 to vector<8x116xf32>
    %291 = arith.mulf %290, %289 : vector<8x116xf32>
    %292 = arith.addf %288, %291 : vector<8x116xf32>
    %c0_201 = arith.constant 0 : index
    %c8_202 = arith.constant 8 : index
    %c0_203 = arith.constant 0 : index
    %293 = vector.load %arg2[%c0_201, %c8_202, %c0_203] : memref<1x16x116xf32, #tpu.memory_space<vmem>>, vector<1x8x116xf32>
    %294 = vector.shape_cast %293 : vector<1x8x116xf32> to vector<8x116xf32>
    %295 = vector.shape_cast %292 : vector<8x116xf32> to vector<1x8x116xf32>
    tpu.vector_store %arg2[%c0_201, %c8_202, %c0_203], %295 {strides = array<i32>} : memref<1x16x116xf32, #tpu.memory_space<vmem>>, vector<1x8x116xf32>,
    return
  }
  func.func @transform_0(%arg0: i32) -> (i32, i32, i32) {
    %c0_i32 = arith.constant 0 : i32
    %c0_i32_0 = arith.constant 0 : i32
    %c0_i32_1 = arith.constant 0 : i32
    return %arg0, %c0_i32, %c0_i32_0 : i32, i32, i32
  }
  func.func @transform_1(%arg0: i32) -> (i32, i32, i32) {
    %c0_i32 = arith.constant 0 : i32
    %c0_i32_0 = arith.constant 0 : i32
    %c0_i32_1 = arith.constant 0 : i32
    return %arg0, %c0_i32, %c0_i32_0 : i32, i32, i32
  }
}

</mosaic_0001>

<bundles_post_ra>
// kernel: tpu_custom_call.1
= control target key start
LH: loop header
LB: loop body
LE: loop exit
PB: predicated region body
PF: predicated region fallthrough
CT: control target
= control target key end

     0   :  { %6 = vsyncpa [#allocation4], 0  ;;  %s1254_s0 = inlined_call_operand.hbm [shape: f32[1,16,96], index: 0, kind: input, shape index: {}]   ;;  %s1255_s1 = inlined_call_operand.hbm [shape: f32[1,16,116], index: 1, kind: output, shape index: {}]  }
   0x1   :  { %7 = vsyncpa [#allocation5], 0  ;;  %s864_s6 = smov [#allocation3]  }
   0x2   :  { %s13_s7 = sshll.u32 %s864_s6, 4  ;;  %s14_s7 = int_to_ptr.vmem [resolvable:$true] %s13_s7 }
   0x3   :  { %s828_s8 = scalar_lea.vmem %s14_s7, 256  ;;  %p833_p1 = scmp.lt.s32.totalorder %s14_s7, %s14_s7 }
   0x4   :  { %p829_p0 = scmp.ne.s32.totalorder %s14_s7, %s828_s8  ;;  %p834_p2 = scmp.lt.s32.totalorder %s828_s8, %s828_s8 }
   0x6   :  { %p835_p3 = por %p834_p2, %p833_p1 }
   0x8   :  { %p836_p4 = pnand %p835_p3, %p829_p0 }
   0xa   :  { %839 = shalt.err (!%p836_p4)
}
   0xb   :  { %s865_s9 = smov 128   ;;  %s866_s10 = smov 8  }
   0xc   :  { %19 = dma.hbm_to_vmem [thread:$0]  %s1254_s0, 256, %s14_s7, [#allocation4], %s865_s9, %s865_s9, %s866_s10  }
   0xd   :  { %860 = dma.done.wait [#allocation4], 256  }
   0xe   :  { %861 = vsyncadd [#allocation4], 4294967040  ;;  %v922_v0 = vld [vmem:[#allocation3] sm:$0xff]  ;;  %s867_s13 = smov 116   ;;  %s868_s14 = smov 114   ;;  %v926_v1 = vld [vmem:[#allocation3 + $0x8] sm:$0xff] }
   0xf   :  { %62 = vrot.lane.b32.xlu1 %v922_v0, %s867_s13  ;;  %56 = vrot.lane.b32.xlu0 %v922_v0, %s868_s14  ;;  %s869_s15 = smov 110   ;;  %s870_s0 = smov 112   ;;  %vm46_vm0 = vcmask 7168   ;;  %vm33_vm1 = vcmask 146448   ;;  %vm49_vm2 = vcmask 15360   ;;  %vm78_vm3 = vcmask 162960  }
  0x10   :  { %s871_s16 = smov 98   ;;  %s872_s17 = smov 100   ;;  %vm91_vm4 = vcmask 310448   ;;  %vm120_vm5 = vcmask 179360   ;;  %vm149_vm6 = vcmask 326960   ;;  %vm162_vm7 = vcmask 474448  }
  0x11   :  { %s873_s18 = smov 94   ;;  %s874_s19 = smov 96   ;;  %vm191_vm8 = vcmask 343360   ;;  %vm220_vm9 = vcmask 490960   ;;  %vm233_vm10 = vcmask 638448   ;;  %vm262_vm11 = vcmask 507360  }
  0x12   :  { %s875_s20 = smov 82   ;;  %s876_s21 = smov 84   ;;  %vm291_vm12 = vcmask 654960   ;;  %vm304_vm13 = vcmask 802448   ;;  %vm333_vm14 = vcmask 671360   ;;  %vm362_vm15 = vcmask 818960  }
  0x13   :  { %64 = vrot.lane.b32.xlu1 %v926_v1, %s867_s13  ;;  %58 = vrot.lane.b32.xlu0 %v926_v1, %s868_s14  ;;  %s877_s22 = smov 78   ;;  %s878_s23 = smov 80  }
  0x14   :  { %s879_s24 = smov 66   ;;  %s880_s25 = smov 68  }
  0x15   :  { %s881_s26 = smov 62   ;;  %s882_s27 = smov 64  }
  0x16   :  { %s883_s28 = smov 50   ;;  %s884_s29 = smov 52  }
  0x17   :  { %100 = vrot.lane.b32.xlu1 %v926_v1, %s869_s15  ;;  %98 = vrot.lane.b32.xlu0 %v922_v0, %s869_s15  ;;  %s885_s30 = smov 46   ;;  %s886_s2 = smov 48  }
  0x18   :  { %s887_s3 = smov 34   ;;  %s888_s4 = smov 36  }
  0x19   :  { %s889_s5 = smov 2   ;;  %s890_s6 = smov 126  }
  0x1a   :  { %s891_s7 = smov 6   ;;  %s892_s8 = smov 10  }
  0x1b   :  { %106 = vrot.lane.b32.xlu1 %v926_v1, %s870_s0  ;;  %104 = vrot.lane.b32.xlu0 %v922_v0, %s870_s0  ;;  %s893_s11 = smov 14   ;;  %s894_s12 = smov 18  }
  0x1c   :  { %s895_s13 = smov 20   ;;  %s896_s14 = smov 38  }
  0x1d   :  { %s897_s15 = smov 40   ;;  %s898_s0 = smov 58  }
  0x1f   :  { %129 = vrot.lane.b32.xlu1 %v926_v1, %s871_s16  ;;  %127 = vrot.lane.b32.xlu0 %v922_v0, %s871_s16 }
  0x23   :  { %135 = vrot.lane.b32.xlu1 %v926_v1, %s872_s17  ;;  %133 = vrot.lane.b32.xlu0 %v922_v0, %s872_s17 }
  0x27   :  { %171 = vrot.lane.b32.xlu1 %v926_v1, %s873_s18  ;;  %169 = vrot.lane.b32.xlu0 %v922_v0, %s873_s18  ;;  %s899_s18 = smov 60  }
  0x2b   :  { %177 = vrot.lane.b32.xlu1 %v926_v1, %s874_s19  ;;  %175 = vrot.lane.b32.xlu0 %v922_v0, %s874_s19  ;;  %s900_s19 = smov 22  }
  0x2f   :  { %200 = vrot.lane.b32.xlu1 %v926_v1, %s875_s20  ;;  %198 = vrot.lane.b32.xlu0 %v922_v0, %s875_s20  ;;  %s903_s20 = smov 125  }
  0x33   :  { %206 = vrot.lane.b32.xlu1 %v926_v1, %s876_s21  ;;  %204 = vrot.lane.b32.xlu0 %v922_v0, %s876_s21  ;;  %s904_s21 = smov 124  }
  0x37   :  { %242 = vrot.lane.b32.xlu1 %v926_v1, %s877_s22  ;;  %240 = vrot.lane.b32.xlu0 %v922_v0, %s877_s22 }
  0x3b   :  { %248 = vrot.lane.b32.xlu1 %v926_v1, %s878_s23  ;;  %246 = vrot.lane.b32.xlu0 %v922_v0, %s878_s23 }
  0x3f   :  { %271 = vrot.lane.b32.xlu1 %v926_v1, %s879_s24  ;;  %269 = vrot.lane.b32.xlu0 %v922_v0, %s879_s24 }
  0x43   :  { %277 = vrot.lane.b32.xlu1 %v926_v1, %s880_s25  ;;  %275 = vrot.lane.b32.xlu0 %v922_v0, %s880_s25 }
  0x47   :  { %313 = vrot.lane.b32.xlu1 %v926_v1, %s881_s26  ;;  %311 = vrot.lane.b32.xlu0 %v922_v0, %s881_s26 }
  0x4b   :  { %319 = vrot.lane.b32.xlu1 %v926_v1, %s882_s27  ;;  %317 = vrot.lane.b32.xlu0 %v922_v0, %s882_s27 }
  0x4f   :  { %342 = vrot.lane.b32.xlu1 %v926_v1, %s883_s28  ;;  %340 = vrot.lane.b32.xlu0 %v922_v0, %s883_s28 }
  0x53   :  { %348 = vrot.lane.b32.xlu1 %v926_v1, %s884_s29  ;;  %346 = vrot.lane.b32.xlu0 %v922_v0, %s884_s29 }
  0x57   :  { %384 = vrot.lane.b32.xlu1 %v926_v1, %s885_s30  ;;  %382 = vrot.lane.b32.xlu0 %v922_v0, %s885_s30 }
  0x5b   :  { %390 = vrot.lane.b32.xlu1 %v926_v1, %s886_s2  ;;  %388 = vrot.lane.b32.xlu0 %v922_v0, %s886_s2 }
  0x5f   :  { %413 = vrot.lane.b32.xlu1 %v926_v1, %s887_s3  ;;  %411 = vrot.lane.b32.xlu0 %v922_v0, %s887_s3 }
  0x63   :  { %419 = vrot.lane.b32.xlu1 %v926_v1, %s888_s4  ;;  %417 = vrot.lane.b32.xlu0 %v922_v0, %s888_s4 }
  0x67   :  { %27 = vrot.lane.b32.xlu0 %v922_v0, %s889_s5  ;;  %29 = vrot.lane.b32.xlu1 %v926_v1, %s889_s5 }
  0x6b   :  { %40 = vrot.lane.b32.xlu0 %v922_v0, %s890_s6  ;;  %42 = vrot.lane.b32.xlu1 %v926_v1, %s890_s6 }
  0x6f   :  { %85 = vrot.lane.b32.xlu0 %v922_v0, %s891_s7  ;;  %87 = vrot.lane.b32.xlu1 %v926_v1, %s891_s7 }
  0x73   :  { %156 = vrot.lane.b32.xlu0 %v922_v0, %s892_s8  ;;  %158 = vrot.lane.b32.xlu1 %v926_v1, %s892_s8 }
  0x77   :  { %227 = vrot.lane.b32.xlu0 %v922_v0, %s893_s11  ;;  %229 = vrot.lane.b32.xlu1 %v926_v1, %s893_s11 }
  0x81   :  { %v63_v2 = vpop.permute.xlu1 %62  ;;  %v57_v3 = vpop.permute.xlu0 %56 }
  0x82   :  { %v68_v4 = vsel %vm46_vm0, %v57_v3, %v63_v2 }
  0x83   :  { %72 = vrot.lane.b32.xlu0 %v68_v4, %s894_s12 }
  0x85   :  { %v65_v5 = vpop.permute.xlu1 %64  ;;  %v59_v6 = vpop.permute.xlu0 %58 }
  0x86   :  { %v69_v7 = vsel %vm46_vm0, %v59_v6, %v65_v5 }
  0x87   :  { %74 = vrot.lane.b32.xlu1 %v69_v7, %s894_s12 }
  0x89   :  { %v101_v8 = vpop.permute.xlu1 %100  ;;  %v99_v9 = vpop.permute.xlu0 %98 }
  0x8d   :  { %v107_v10 = vpop.permute.xlu1 %106  ;;  %v105_v11 = vpop.permute.xlu0 %104 }
  0x8e   :  { %v110_v12 = vsel %vm46_vm0, %v99_v9, %v105_v11  ;;  %v111_v13 = vsel %vm46_vm0, %v101_v8, %v107_v10 }
  0x8f   :  { %114 = vrot.lane.b32.xlu0 %v110_v12, %s895_s13  ;;  %116 = vrot.lane.b32.xlu1 %v111_v13, %s895_s13 }
  0x91   :  { %v130_v14 = vpop.permute.xlu1 %129  ;;  %v128_v15 = vpop.permute.xlu0 %127 }
  0x95   :  { %v136_v16 = vpop.permute.xlu1 %135  ;;  %v134_v17 = vpop.permute.xlu0 %133 }
  0x96   :  { %v139_v18 = vsel %vm46_vm0, %v128_v15, %v134_v17  ;;  %v140_v19 = vsel %vm46_vm0, %v130_v14, %v136_v16 }
  0x97   :  { %143 = vrot.lane.b32.xlu0 %v139_v18, %s896_s14  ;;  %145 = vrot.lane.b32.xlu1 %v140_v19, %s896_s14 }
  0x99   :  { %v172_v20 = vpop.permute.xlu1 %171  ;;  %v170_v21 = vpop.permute.xlu0 %169 }
  0x9d   :  { %v178_v22 = vpop.permute.xlu1 %177  ;;  %v176_v23 = vpop.permute.xlu0 %175 }
  0x9e   :  { %v181_v24 = vsel %vm46_vm0, %v170_v21, %v176_v23  ;;  %v182_v25 = vsel %vm46_vm0, %v172_v20, %v178_v22 }
  0x9f   :  { %185 = vrot.lane.b32.xlu0 %v181_v24, %s897_s15  ;;  %187 = vrot.lane.b32.xlu1 %v182_v25, %s897_s15 }
  0xa1   :  { %v201_v26 = vpop.permute.xlu1 %200  ;;  %v199_v27 = vpop.permute.xlu0 %198 }
  0xa5   :  { %v207_v28 = vpop.permute.xlu1 %206  ;;  %v205_v29 = vpop.permute.xlu0 %204 }
  0xa6   :  { %v210_v30 = vsel %vm46_vm0, %v199_v27, %v205_v29  ;;  %v211_v31 = vsel %vm46_vm0, %v201_v26, %v207_v28 }
  0xa7   :  { %214 = vrot.lane.b32.xlu0 %v210_v30, %s898_s0  ;;  %216 = vrot.lane.b32.xlu1 %v211_v31, %s898_s0 }
  0xa9   :  { %v243_v32 = vpop.permute.xlu1 %242  ;;  %v241_v33 = vpop.permute.xlu0 %240 }
  0xad   :  { %v249_v34 = vpop.permute.xlu1 %248  ;;  %v247_v35 = vpop.permute.xlu0 %246 }
  0xae   :  { %v252_v36 = vsel %vm46_vm0, %v241_v33, %v247_v35  ;;  %v253_v37 = vsel %vm46_vm0, %v243_v32, %v249_v34 }
  0xaf   :  { %256 = vrot.lane.b32.xlu0 %v252_v36, %s899_s18  ;;  %258 = vrot.lane.b32.xlu1 %v253_v37, %s899_s18 }
  0xb1   :  { %v272_v38 = vpop.permute.xlu1 %271  ;;  %v270_v39 = vpop.permute.xlu0 %269 }
  0xb5   :  { %v278_v40 = vpop.permute.xlu1 %277  ;;  %v276_v41 = vpop.permute.xlu0 %275 }
  0xb6   :  { %v281_v42 = vsel %vm46_vm0, %v270_v39, %v276_v41  ;;  %v282_v43 = vsel %vm46_vm0, %v272_v38, %v278_v40 }
  0xb7   :  { %285 = vrot.lane.b32.xlu0 %v281_v42, %s877_s22  ;;  %287 = vrot.lane.b32.xlu1 %v282_v43, %s877_s22  ;;  %s905_s22 = smov [#allocation6]  }
  0xb9   :  { %v314_v44 = vpop.permute.xlu1 %313  ;;  %v312_v45 = vpop.permute.xlu0 %311 }
  0xbb   :  { %298 = vrot.lane.b32.xlu0 %v922_v0, %s894_s12  ;;  %300 = vrot.lane.b32.xlu1 %v926_v1, %s894_s12 }
  0xbd   :  { %v320_v46 = vpop.permute.xlu1 %319  ;;  %v318_v47 = vpop.permute.xlu0 %317 }
  0xbe   :  { %v323_v48 = vsel %vm46_vm0, %v312_v45, %v318_v47  ;;  %v324_v49 = vsel %vm46_vm0, %v314_v44, %v320_v46 }
  0xbf   :  { %327 = vrot.lane.b32.xlu0 %v323_v48, %s878_s23  ;;  %329 = vrot.lane.b32.xlu1 %v324_v49, %s878_s23  ;;  %s766_s23 = sshll.u32 %s905_s22, 4  ;;  %s767_s23 = int_to_ptr.vmem [resolvable:$true] %s766_s23 }
  0xc0   :  { %s840_s24 = scalar_lea.vmem %s767_s23, 256  ;;  %p845_p6 = scmp.lt.s32.totalorder %s767_s23, %s767_s23 }
  0xc1   :  { %v343_v50 = vpop.permute.xlu1 %342  ;;  %v341_v51 = vpop.permute.xlu0 %340  ;;  %p841_p5 = scmp.ne.s32.totalorder %s767_s23, %s840_s24  ;;  %p846_p7 = scmp.lt.s32.totalorder %s840_s24, %s840_s24 }
  0xc3   :  { %p847_p8 = por %p846_p7, %p845_p6 }
  0xc5   :  { %v349_v52 = vpop.permute.xlu1 %348  ;;  %v347_v53 = vpop.permute.xlu0 %346  ;;  %p848_p9 = pnand %p847_p8, %p841_p5 }
  0xc6   :  { %v352_v54 = vsel %vm46_vm0, %v341_v51, %v347_v53  ;;  %v353_v55 = vsel %vm46_vm0, %v343_v50, %v349_v52 }
  0xc7   :  { %356 = vrot.lane.b32.xlu0 %v352_v54, %s871_s16  ;;  %358 = vrot.lane.b32.xlu1 %v353_v55, %s871_s16  ;;  %s901_s16 = smov 118  }
  0xc9   :  { %v385_v56 = vpop.permute.xlu1 %384  ;;  %v383_v57 = vpop.permute.xlu0 %382 }
  0xcb   :  { %369 = vrot.lane.b32.xlu0 %v922_v0, %s900_s19  ;;  %371 = vrot.lane.b32.xlu1 %v926_v1, %s900_s19 }
  0xcd   :  { %v391_v58 = vpop.permute.xlu1 %390  ;;  %v389_v59 = vpop.permute.xlu0 %388 }
  0xce   :  { %v394_v60 = vsel %vm46_vm0, %v383_v57, %v389_v59  ;;  %v395_v61 = vsel %vm46_vm0, %v385_v56, %v391_v58 }
  0xcf   :  { %398 = vrot.lane.b32.xlu0 %v394_v60, %s872_s17  ;;  %400 = vrot.lane.b32.xlu1 %v395_v61, %s872_s17  ;;  %s902_s17 = smov 127  }
  0xd1   :  { %v414_v62 = vpop.permute.xlu1 %413  ;;  %v412_v63 = vpop.permute.xlu0 %411 }
  0xd5   :  { %v420_v2 = vpop.permute.xlu1 %419  ;;  %v418_v3 = vpop.permute.xlu0 %417 }
  0xd6   :  { %v424_v4 = vsel %vm46_vm0, %v414_v62, %v420_v2  ;;  %v423_v5 = vsel %vm46_vm0, %v412_v63, %v418_v3 }
  0xd7   :  { %429 = vrot.lane.b32.xlu1 %v424_v4, %s901_s16  ;;  %427 = vrot.lane.b32.xlu0 %v423_v5, %s901_s16 }
  0xd9   :  { %v28_v6 = vpop.permute.xlu0 %27  ;;  %v30_v7 = vpop.permute.xlu1 %29 }
  0xda   :  { %34 = vst.msk [vmem:[#allocation2 + $0x2] sm:$0xff] %vm33_vm1, %v28_v6  ;;  %35 = vst.msk [vmem:[#allocation2 + $0xa] sm:$0xff] %vm33_vm1, %v30_v7  ;;  %vm404_vm1 = vcmask 835360  }
  0xdd   :  { %v41_v8 = vpop.permute.xlu0 %40  ;;  %v43_v9 = vpop.permute.xlu1 %42 }
  0xde   :  { %v47_v10 = vsel %vm46_vm0, %v41_v8, %v922_v0  ;;  %v48_v11 = vsel %vm46_vm0, %v43_v9, %v926_v1  ;;  %vm375_vm0 = vcmask 966448  }
  0xdf   :  { %50 = vst.msk [vmem:[#allocation2 + $0x2] sm:$0xff] %vm49_vm2, %v47_v10  ;;  %51 = vst.msk [vmem:[#allocation2 + $0xa] sm:$0xff] %vm49_vm2, %v48_v11  ;;  %vm433_vm2 = vcmask 982960  }
  0xe1   :  { %v86_v12 = vpop.permute.xlu0 %85  ;;  %v88_v13 = vpop.permute.xlu1 %87 }
  0xe5   :  { %v157_v14 = vpop.permute.xlu0 %156  ;;  %v159_v15 = vpop.permute.xlu1 %158 }
  0xe9   :  { %v228_v16 = vpop.permute.xlu0 %227  ;;  %v230_v17 = vpop.permute.xlu1 %229 }
  0xf5   :  { %v73_v18 = vpop.permute.xlu0 %72 }
  0xf6   :  { %79 = vst.msk [vmem:[#allocation2 + $0x2] sm:$0xff] %vm78_vm3, %v73_v18 }
  0xf7   :  { %92 = vst.msk [vmem:[#allocation2 + $0x2] sm:$0xff] %vm91_vm4, %v86_v12 }
  0xf9   :  { %v75_v19 = vpop.permute.xlu1 %74 }
  0xfa   :  { %80 = vst.msk [vmem:[#allocation2 + $0xa] sm:$0xff] %vm78_vm3, %v75_v19  ;;  %vm441_vm3 = vcmask 1040384  }
  0xfb   :  { %93 = vst.msk [vmem:[#allocation2 + $0xa] sm:$0xff] %vm91_vm4, %v88_v13  ;;  %vm443_vm4 = vcmask 975872  }
 0x101   :  { %v115_v0 = vpop.permute.xlu0 %114  ;;  %v117_v20 = vpop.permute.xlu1 %116 }
 0x102   :  { %121 = vst.msk [vmem:[#allocation2 + $0x2] sm:$0xff] %vm120_vm5, %v115_v0  ;;  %122 = vst.msk [vmem:[#allocation2 + $0xa] sm:$0xff] %vm120_vm5, %v117_v20  ;;  %vm460_vm5 = vcmask 1046528  }
 0x109   :  { %v144_v1 = vpop.permute.xlu0 %143  ;;  %v146_v21 = vpop.permute.xlu1 %145 }
 0x10a   :  { %150 = vst.msk [vmem:[#allocation2 + $0x2] sm:$0xff] %vm149_vm6, %v144_v1  ;;  %151 = vst.msk [vmem:[#allocation2 + $0xa] sm:$0xff] %vm149_vm6, %v146_v21  ;;  %vm470_vm6 = vcmask 1045504  }
 0x10b   :  { %163 = vst.msk [vmem:[#allocation2 + $0x2] sm:$0xff] %vm162_vm7, %v157_v14  ;;  %164 = vst.msk [vmem:[#allocation2 + $0xa] sm:$0xff] %vm162_vm7, %v159_v15  ;;  %vm476_vm7 = vcmask 1044480  }
 0x111   :  { %v186_v22 = vpop.permute.xlu0 %185  ;;  %v188_v23 = vpop.permute.xlu1 %187 }
 0x112   :  { %192 = vst.msk [vmem:[#allocation2 + $0x2] sm:$0xff] %vm191_vm8, %v186_v22  ;;  %193 = vst.msk [vmem:[#allocation2 + $0xa] sm:$0xff] %vm191_vm8, %v188_v23  ;;  %vm485_vm8 = vcmask 1043456  }
 0x119   :  { %v215_v24 = vpop.permute.xlu0 %214  ;;  %v217_v25 = vpop.permute.xlu1 %216 }
 0x11a   :  { %221 = vst.msk [vmem:[#allocation2 + $0x2] sm:$0xff] %vm220_vm9, %v215_v24  ;;  %222 = vst.msk [vmem:[#allocation2 + $0xa] sm:$0xff] %vm220_vm9, %v217_v25  ;;  %vm607_vm9 = vcmask 949248  }
 0x11b   :  { %234 = vst.msk [vmem:[#allocation2 + $0x2] sm:$0xff] %vm233_vm10, %v228_v16  ;;  %235 = vst.msk [vmem:[#allocation2 + $0xa] sm:$0xff] %vm233_vm10, %v230_v17 }
 0x121   :  { %v257_v26 = vpop.permute.xlu0 %256  ;;  %v259_v27 = vpop.permute.xlu1 %258 }
 0x122   :  { %263 = vst.msk [vmem:[#allocation2 + $0x2] sm:$0xff] %vm262_vm11, %v257_v26  ;;  %264 = vst.msk [vmem:[#allocation2 + $0xa] sm:$0xff] %vm262_vm11, %v259_v27 }
 0x129   :  { %v286_v28 = vpop.permute.xlu0 %285  ;;  %v288_v29 = vpop.permute.xlu1 %287 }
 0x12a   :  { %292 = vst.msk [vmem:[#allocation2 + $0x2] sm:$0xff] %vm291_vm12, %v286_v28  ;;  %293 = vst.msk [vmem:[#allocation2 + $0xa] sm:$0xff] %vm291_vm12, %v288_v29 }
 0x12d   :  { %v299_v30 = vpop.permute.xlu0 %298  ;;  %v301_v31 = vpop.permute.xlu1 %300 }
 0x12e   :  { %305 = vst.msk [vmem:[#allocation2 + $0x2] sm:$0xff] %vm304_vm13, %v299_v30  ;;  %306 = vst.msk [vmem:[#allocation2 + $0xa] sm:$0xff] %vm304_vm13, %v301_v31 }
 0x131   :  { %v328_v32 = vpop.permute.xlu0 %327  ;;  %v330_v33 = vpop.permute.xlu1 %329 }
 0x132   :  { %334 = vst.msk [vmem:[#allocation2 + $0x2] sm:$0xff] %vm333_vm14, %v328_v32  ;;  %335 = vst.msk [vmem:[#allocation2 + $0xa] sm:$0xff] %vm333_vm14, %v330_v33 }
 0x139   :  { %v357_v34 = vpop.permute.xlu0 %356  ;;  %v359_v35 = vpop.permute.xlu1 %358 }
 0x13a   :  { %363 = vst.msk [vmem:[#allocation2 + $0x2] sm:$0xff] %vm362_vm15, %v357_v34  ;;  %364 = vst.msk [vmem:[#allocation2 + $0xa] sm:$0xff] %vm362_vm15, %v359_v35 }
 0x13d   :  { %v370_v36 = vpop.permute.xlu0 %369  ;;  %v372_v37 = vpop.permute.xlu1 %371 }
 0x13e   :  { %376 = vst.msk [vmem:[#allocation2 + $0x2] sm:$0xff] %vm375_vm0, %v370_v36  ;;  %377 = vst.msk [vmem:[#allocation2 + $0xa] sm:$0xff] %vm375_vm0, %v372_v37 }
 0x141   :  { %v399_v38 = vpop.permute.xlu0 %398  ;;  %v401_v39 = vpop.permute.xlu1 %400 }
 0x142   :  { %405 = vst.msk [vmem:[#allocation2 + $0x2] sm:$0xff] %vm404_vm1, %v399_v38  ;;  %406 = vst.msk [vmem:[#allocation2 + $0xa] sm:$0xff] %vm404_vm1, %v401_v39 }
 0x149   :  { %v430_v40 = vpop.permute.xlu1 %429  ;;  %v428_v41 = vpop.permute.xlu0 %427 }
 0x14a   :  { %435 = vst.msk [vmem:[#allocation2 + $0xa] sm:$0xff] %vm433_vm2, %v430_v40  ;;  %434 = vst.msk [vmem:[#allocation2 + $0x2] sm:$0xff] %vm433_vm2, %v428_v41 }
 0x151   :  { %v445_v42 = vld [vmem:[#allocation2 + $0x10] sm:$0x1]  ;;  %v446_v43 = vld [vmem:[#allocation2 + $0xf] sm:$0x1]  ;;  %v437_v45 = vld [vmem:[#allocation2 + $0x3] sm:$0x1] }
 0x152   :  { %v448_v44 = vrot.slane %v446_v43, 7  ;;  %v1032_v46 = vld [vmem:[#allocation2 + $0x8] sm:$0xff]  ;;  %v439_v47 = vrot.slane %v437_v45, 7  ;;  %v436_v50 = vld [vmem:[#allocation2 + $0x4] sm:$0x1] }
 0x153   :  { %v1035_v48 = vmul.f32 0.015719416, %v1032_v46  ;;  %v1040_v52 = vmul.f32 0.020157779, %v1032_v46  ;;  %v648_v55 = vmul.f32 0.040059876, %v1032_v46 }
 0x154   :  { %v450_v49 = vsel %vm441_vm3, %v445_v42, %v448_v44  ;;  %v442_v51 = vsel %vm441_vm3, %v436_v50, %v439_v47  ;;  %v1056_v58 = vmul.f32 0.008738643, %v1032_v46  ;;  %v1058_v59 = vld [vmem:[#allocation2 + $0x8] sm:$0xf]  ;;  %v1068_v63 = vmul.f32 0.07927255, %v1032_v46 }
 0x155   :  { %451 = vst.msk [vmem:[#allocation2 + $0x12] sm:$0x3] %vm443_vm4, %v450_v49  ;;  %644 = vrot.lane.b32.xlu1 %v1035_v48, %s902_s17  ;;  %444 = vst.msk [vmem:[#allocation2] sm:$0x3] %vm443_vm4, %v442_v51  ;;  %v652_v62 = vrot.slane %v648_v55, 1  ;;  %v677_v6 = vrot.slane %v1035_v48, 4 }
 0x156   :  { %v1077_v4 = vmul.f32 0.015719416, %v1058_v59  ;;  %v1080_v5 = vmul.f32 0.040059876, %v1058_v59  ;;  %v1090_v9 = vmul.f32 0.07927255, %v1058_v59 }
 0x157   :  { %v1093_v10 = vmul.f32 0.020157779, %v1058_v59  ;;  %v663_v11 = vrot.slane %v1068_v63, 2  ;;  %v670_v12 = vrot.slane %v648_v55, 3  ;;  %v617_v14 = vrot.slane %v1035_v48, 1 }
 0x158   :  { %v626_v16 = vrot.slane %v1040_v52, 2  ;;  %v631_v17 = vrot.slane %v1035_v48, 3  ;;  %v462_v18 = vrot.slane %v1077_v4, 1  ;;  %v639_v1 = vrot.slane %v1056_v58, 4 }
 0x159   :  { %684 = vrot.lane.b32.xlu1 %v1040_v52, %s890_s6  ;;  %v472_v24 = vrot.slane %v1093_v10, 2  ;;  %v482_v28 = vmul.f32 0.008738643, %v1058_v59  ;;  %v500_v41 = vrot.slane %v1080_v5, 1  ;;  %v478_v43 = vrot.slane %v1077_v4, 3 }
 0x15c   :  { %v1044_v53 = vld [vmem:[#allocation2 + $0x10] sm:$0xf]  ;;  %v1048_v54 = vld [vmem:[#allocation2] sm:$0xff] }
 0x15d   :  { %720 = vrot.lane.b32.xlu1 %v1035_v48, %s903_s20  ;;  %v649_v56 = vmul.f32 0.040059876, %v1044_v53  ;;  %v1053_v57 = vmul.f32 0.015719416, %v1048_v54  ;;  %v1063_v61 = vmul.f32 0.07927255, %v1044_v53 }
 0x15e   :  { %v1071_v2 = vmul.f32 0.020157779, %v1048_v54  ;;  %v1074_v3 = vmul.f32 0.015719416, %v1044_v53  ;;  %v1099_v13 = vmul.f32 0.020157779, %v1044_v53 }
 0x15f   :  { %491 = vrot.lane.b32.xlu0 %v1053_v57, %s902_s17  ;;  %v653_v60 = vrot.slane %v649_v56, 1  ;;  %v664_v8 = vrot.slane %v1063_v61, 2  ;;  %v671_v19 = vrot.slane %v649_v56, 3  ;;  %v495_v0 = vmul.f32 0.040059876, %v1048_v54 }
 0x160   :  { %v618_v15 = vrot.slane %v1074_v3, 1  ;;  %v627_v20 = vrot.slane %v1099_v13, 2  ;;  %v632_v23 = vrot.slane %v1074_v3, 3  ;;  %v454_v25 = vmul.f32 0.008738643, %v1048_v54 }
 0x161   :  { %740 = vrot.lane.b32.xlu1 %v1056_v58, %s904_s21  ;;  %v1086_v7 = vsel %vm460_vm5, %v652_v62, %v653_v60  ;;  %v1112_v21 = vsel %vm470_vm6, %v663_v11, %v664_v8  ;;  %v1123_v26 = vmul.f32 0.07927255, %v1048_v54  ;;  %v461_v30 = vrot.slane %v1053_v57, 1 }
 0x162   :  { %v1115_v22 = vsel %vm460_vm5, %v617_v14, %v618_v15  ;;  %v1129_v29 = vsel %vm470_vm6, %v626_v16, %v627_v20  ;;  %v636_v31 = vmul.f32 0.008738643, %v1044_v53  ;;  %v471_v32 = vrot.slane %v1071_v2, 2 }
 0x163   :  { %531 = vrot.lane.b32.xlu0 %v1071_v2, %s890_s6  ;;  %v621_v27 = vadd.f32 %v1115_v22, %v1056_v58  ;;  %v1135_v33 = vsel %vm476_vm7, %v670_v12, %v671_v19  ;;  %v499_v34 = vrot.slane %v495_v0, 1  ;;  %v678_v35 = vrot.slane %v1074_v3, 4 }
 0x164   :  { %v1141_v37 = vsel %vm476_vm7, %v631_v17, %v632_v23  ;;  %v1144_v38 = vsel %vm460_vm5, %v461_v30, %v462_v18  ;;  %v640_v39 = vrot.slane %v636_v31, 4  ;;  %v477_v40 = vrot.slane %v1053_v57, 3 }
 0x165   :  { %655 = vrot.lane.b32.xlu1 %v1086_v7, %s902_s17  ;;  %v630_v36 = vadd.f32 %v1129_v29, %v621_v27  ;;  %v465_v42 = vadd.f32 %v1144_v38, %v454_v25  ;;  %v689_v45 = vrot.slane %v1063_v61, 1  ;;  %v1158_v48 = vsel %vm470_vm6, %v471_v32, %v472_v24 }
 0x166   :  { %v1155_v47 = vsel %vm485_vm8, %v639_v1, %v640_v39  ;;  %v486_v49 = vrot.slane %v454_v25, 4  ;;  %v501_v50 = vsel %vm460_vm5, %v499_v34, %v500_v41  ;;  %v510_v51 = vrot.slane %v1123_v26, 2 }
 0x167   :  { %567 = vrot.lane.b32.xlu0 %v1053_v57, %s903_s20  ;;  %v635_v44 = vadd.f32 %v1141_v37, %v630_v36  ;;  %v475_v55 = vadd.f32 %v1158_v48, %v465_v42  ;;  %v679_v58 = vsel %vm485_vm8, %v677_v6, %v678_v35  ;;  %v696_v60 = vmul.f32 0.28132927, %v1044_v53 }
 0x168   :  { %v1170_v62 = vsel %vm476_vm7, %v477_v40, %v478_v43  ;;  %v487_v3 = vrot.slane %v482_v28, 4  ;;  %v511_v8 = vrot.slane %v1090_v9, 2  ;;  %v688_v12 = vrot.slane %v1068_v63, 1 }
 0x169   :  { %666 = vrot.lane.b32.xlu1 %v1112_v21, %s902_s17  ;;  %v1164_v56 = vadd.f32 %v1155_v47, %v635_v44  ;;  %v481_v11 = vadd.f32 %v1170_v62, %v475_v55  ;;  %v695_v14 = vmul.f32 0.28132927, %v1032_v46  ;;  %v517_v16 = vrot.slane %v495_v0, 3 }
 0x16a   :  { %v488_v15 = vsel %vm485_vm8, %v486_v49, %v487_v3  ;;  %v512_v6 = vsel %vm470_vm6, %v510_v51, %v511_v8  ;;  %v690_v17 = vsel %vm460_vm5, %v688_v12, %v689_v45  ;;  %v700_v18 = vrot.slane %v696_v60, 2 }
 0x16b   :  { %587 = vrot.lane.b32.xlu0 %v454_v25, %s904_s21  ;;  %v1179_v53 = vadd.f32 %v488_v15, %v481_v11  ;;  %v518_v19 = vrot.slane %v1080_v5, 3  ;;  %v699_v20 = vrot.slane %v695_v14, 2  ;;  %v524_v46 = vrot.slane %v1053_v57, 4 }
 0x16c   :  { %v707_v23 = vrot.slane %v1063_v61, 3  ;;  %v525_v24 = vrot.slane %v1077_v4, 4  ;;  %v706_v25 = vrot.slane %v1068_v63, 3  ;;  %v535_v5 = vrot.slane %v1123_v26, 1 }
 0x16d   :  { %673 = vrot.lane.b32.xlu1 %v1135_v33, %s902_s17  ;;  %v519_v1 = vsel %vm476_vm7, %v517_v16, %v518_v19  ;;  %v701_v0 = vsel %vm470_vm6, %v699_v20, %v700_v18  ;;  %v542_v28 = vmul.f32 0.28132927, %v1048_v54  ;;  %v714_v30 = vrot.slane %v1099_v13, 4 }
 0x16e   :  { %v526_v27 = vsel %vm485_vm8, %v524_v46, %v525_v24  ;;  %v708_v57 = vsel %vm476_vm7, %v706_v25, %v707_v23  ;;  %v536_v61 = vrot.slane %v1090_v9, 1  ;;  %v543_v4 = vmul.f32 0.28132927, %v1058_v59 }
 0x16f   :  { %502 = vrot.lane.b32.xlu0 %v501_v50, %s902_s17  ;;  %v713_v63 = vrot.slane %v1040_v52, 4  ;;  %v546_v32 = vrot.slane %v542_v28, 2  ;;  %v553_v35 = vrot.slane %v1123_v26, 3  ;;  %v554_v52 = vrot.slane %v1090_v9, 3 }
 0x170   :  { %v537_v31 = vsel %vm460_vm5, %v535_v5, %v536_v61  ;;  %v547_v34 = vrot.slane %v543_v4, 2  ;;  %v560_v36 = vrot.slane %v1071_v2, 4  ;;  %v561_v39 = vrot.slane %v1093_v10, 4 }
 0x171   :  { %680 = vrot.lane.b32.xlu1 %v679_v58, %s902_s17  ;;  %v715_v54 = vsel %vm485_vm8, %v713_v63, %v714_v30  ;;  %v555_v59 = vsel %vm476_vm7, %v553_v35, %v554_v52 }
 0x172   :  { %v548_v13 = vsel %vm470_vm6, %v546_v32, %v547_v34  ;;  %v562_v26 = vsel %vm485_vm8, %v560_v36, %v561_v39 }
 0x173   :  { %513 = vrot.lane.b32.xlu0 %v512_v6, %s902_s17 }
 0x175   :  { %691 = vrot.lane.b32.xlu1 %v690_v17, %s890_s6 }
 0x177   :  { %520 = vrot.lane.b32.xlu0 %v519_v1, %s902_s17 }
 0x179   :  { %702 = vrot.lane.b32.xlu1 %v701_v0, %s890_s6 }
 0x17b   :  { %527 = vrot.lane.b32.xlu0 %v526_v27, %s902_s17 }
 0x17d   :  { %709 = vrot.lane.b32.xlu1 %v708_v57, %s890_s6 }
 0x17f   :  { %538 = vrot.lane.b32.xlu0 %v537_v31, %s890_s6 }
 0x181   :  { %716 = vrot.lane.b32.xlu1 %v715_v54, %s890_s6 }
 0x183   :  { %549 = vrot.lane.b32.xlu0 %v548_v13, %s890_s6 }
 0x185   :  { %724 = vrot.lane.b32.xlu1 %v1086_v7, %s903_s20 }
 0x187   :  { %556 = vrot.lane.b32.xlu0 %v555_v59, %s890_s6 }
 0x189   :  { %728 = vrot.lane.b32.xlu1 %v1112_v21, %s903_s20 }
 0x18b   :  { %563 = vrot.lane.b32.xlu0 %v562_v26, %s890_s6 }
 0x18d   :  { %732 = vrot.lane.b32.xlu1 %v1135_v33, %s903_s20 }
 0x18f   :  { %571 = vrot.lane.b32.xlu0 %v501_v50, %s903_s20 }
 0x191   :  { %736 = vrot.lane.b32.xlu1 %v679_v58, %s903_s20 }
 0x193   :  { %575 = vrot.lane.b32.xlu0 %v512_v6, %s903_s20 }
 0x195   :  { %744 = vrot.lane.b32.xlu1 %v1115_v22, %s904_s21 }
 0x197   :  { %579 = vrot.lane.b32.xlu0 %v519_v1, %s903_s20 }
 0x199   :  { %748 = vrot.lane.b32.xlu1 %v1129_v29, %s904_s21 }
 0x19b   :  { %583 = vrot.lane.b32.xlu0 %v526_v27, %s903_s20 }
 0x19d   :  { %752 = vrot.lane.b32.xlu1 %v1141_v37, %s904_s21 }
 0x19f   :  { %591 = vrot.lane.b32.xlu0 %v1144_v38, %s904_s21 }
 0x1a1   :  { %756 = vrot.lane.b32.xlu1 %v1155_v47, %s904_s21 }
 0x1a3   :  { %595 = vrot.lane.b32.xlu0 %v1158_v48, %s904_s21 }
 0x1a7   :  { %599 = vrot.lane.b32.xlu0 %v1170_v62, %s904_s21 }
 0x1ab   :  { %603 = vrot.lane.b32.xlu0 %v488_v15, %s904_s21 }
 0x1c7   :  { %v645_v2 = vpop.permute.xlu1 %644 }
 0x1c8   :  { %v647_v41 = vadd.f32 %v645_v2, %v1164_v56 }
 0x1cb   :  { %v685_v7 = vpop.permute.xlu1 %684 }
 0x1cf   :  { %v721_v9 = vpop.permute.xlu1 %720 }
 0x1d1   :  { %v492_v10 = vpop.permute.xlu0 %491 }
 0x1d2   :  { %v494_v58 = vadd.f32 %v492_v10, %v1179_v53 }
 0x1d3   :  { %v741_v21 = vpop.permute.xlu1 %740 }
 0x1d5   :  { %v532_v22 = vpop.permute.xlu0 %531 }
 0x1d7   :  { %v656_v29 = vpop.permute.xlu1 %655 }
 0x1d8   :  { %v658_v44 = vadd.f32 %v656_v29, %v647_v41 }
 0x1d9   :  { %v568_v33 = vpop.permute.xlu0 %567 }
 0x1db   :  { %v667_v37 = vpop.permute.xlu1 %666 }
 0x1dc   :  { %v669_v45 = vadd.f32 %v667_v37, %v658_v44 }
 0x1dd   :  { %v1243_v38 = vpop.permute.xlu0 %587 }
 0x1df   :  { %v674_v40 = vpop.permute.xlu1 %673 }
 0x1e0   :  { %v676_v49 = vadd.f32 %v674_v40, %v669_v45 }
 0x1e1   :  { %v503_v42 = vpop.permute.xlu0 %502 }
 0x1e2   :  { %v505_v3 = vadd.f32 %v503_v42, %v494_v58 }
 0x1e3   :  { %v681_v43 = vpop.permute.xlu1 %680 }
 0x1e4   :  { %v683_v50 = vadd.f32 %v681_v43, %v676_v49 }
 0x1e5   :  { %v514_v47 = vpop.permute.xlu0 %513 }
 0x1e6   :  { %v687_v60 = vadd.f32 %v685_v7, %v683_v50  ;;  %v516_v11 = vadd.f32 %v514_v47, %v505_v3 }
 0x1e7   :  { %v692_v48 = vpop.permute.xlu1 %691 }
 0x1e8   :  { %v694_v12 = vadd.f32 %v692_v48, %v687_v60 }
 0x1e9   :  { %v521_v51 = vpop.permute.xlu0 %520 }
 0x1ea   :  { %v523_v56 = vadd.f32 %v521_v51, %v516_v11 }
 0x1eb   :  { %v703_v55 = vpop.permute.xlu1 %702 }
 0x1ec   :  { %v705_v6 = vadd.f32 %v703_v55, %v694_v12 }
 0x1ed   :  { %v528_v62 = vpop.permute.xlu0 %527 }
 0x1ee   :  { %v530_v16 = vadd.f32 %v528_v62, %v523_v56 }
 0x1ef   :  { %v710_v8 = vpop.permute.xlu1 %709 }
 0x1f0   :  { %v712_v17 = vadd.f32 %v710_v8, %v705_v6  ;;  %v534_v1 = vadd.f32 %v532_v22, %v530_v16 }
 0x1f1   :  { %v539_v14 = vpop.permute.xlu0 %538 }
 0x1f2   :  { %v541_v53 = vadd.f32 %v539_v14, %v534_v1 }
 0x1f3   :  { %v717_v15 = vpop.permute.xlu1 %716 }
 0x1f4   :  { %v719_v20 = vadd.f32 %v717_v15, %v712_v17 }
 0x1f5   :  { %v550_v18 = vpop.permute.xlu0 %549 }
 0x1f6   :  { %v723_v23 = vadd.f32 %v721_v9, %v719_v20  ;;  %v552_v25 = vadd.f32 %v550_v18, %v541_v53 }
 0x1f7   :  { %v725_v19 = vpop.permute.xlu1 %724 }
 0x1f8   :  { %v727_v5 = vadd.f32 %v725_v19, %v723_v23 }
 0x1f9   :  { %v557_v46 = vpop.permute.xlu0 %556 }
 0x1fa   :  { %v559_v28 = vadd.f32 %v557_v46, %v552_v25 }
 0x1fb   :  { %v729_v0 = vpop.permute.xlu1 %728 }
 0x1fc   :  { %v731_v57 = vadd.f32 %v729_v0, %v727_v5 }
 0x1fd   :  { %v564_v24 = vpop.permute.xlu0 %563 }
 0x1fe   :  { %v566_v61 = vadd.f32 %v564_v24, %v559_v28 }
 0x1ff   :  { %v733_v27 = vpop.permute.xlu1 %732 }
 0x200   :  { %v735_v63 = vadd.f32 %v733_v27, %v731_v57  ;;  %v570_v54 = vadd.f32 %v568_v33, %v566_v61 }
 0x201   :  { %v572_v30 = vpop.permute.xlu0 %571 }
 0x202   :  { %v574_v52 = vadd.f32 %v572_v30, %v570_v54 }
 0x203   :  { %v737_v4 = vpop.permute.xlu1 %736 }
 0x204   :  { %v739_v31 = vadd.f32 %v737_v4, %v735_v63 }
 0x205   :  { %v576_v32 = vpop.permute.xlu0 %575 }
 0x206   :  { %v743_v13 = vadd.f32 %v741_v21, %v739_v31  ;;  %v578_v36 = vadd.f32 %v576_v32, %v574_v52 }
 0x207   :  { %v745_v34 = vpop.permute.xlu1 %744 }
 0x208   :  { %v747_v39 = vadd.f32 %v745_v34, %v743_v13 }
 0x209   :  { %v580_v35 = vpop.permute.xlu0 %579 }
 0x20a   :  { %v582_v2 = vadd.f32 %v580_v35, %v578_v36 }
 0x20b   :  { %v749_v59 = vpop.permute.xlu1 %748 }
 0x20c   :  { %v751_v9 = vadd.f32 %v749_v59, %v747_v39 }
 0x20d   :  { %v584_v26 = vpop.permute.xlu0 %583 }
 0x20e   :  { %v586_v10 = vadd.f32 %v584_v26, %v582_v2 }
 0x20f   :  { %v753_v7 = vpop.permute.xlu1 %752 }
 0x210   :  { %v755_v22 = vadd.f32 %v753_v7, %v751_v9  ;;  %v590_v41 = vadd.f32 %v1243_v38, %v586_v10 }
 0x211   :  { %v592_v29 = vpop.permute.xlu0 %591 }
 0x212   :  { %v594_v21 = vadd.f32 %v592_v29, %v590_v41 }
 0x213   :  { %v757_v37 = vpop.permute.xlu1 %756 }
 0x214   :  { %v759_v40 = vadd.f32 %v757_v37, %v755_v22 }
 0x215   :  { %v596_v33 = vpop.permute.xlu0 %595 }
 0x216   :  { %760 = vst.msk [vmem:[#allocation6 + $0x8] sm:$0xff] %vm607_vm9, %v759_v40  ;;  %v598_v43 = vadd.f32 %v596_v33, %v594_v21 }
 0x219   :  { %v600_v42 = vpop.permute.xlu0 %599 }
 0x21a   :  { %v602_v44 = vadd.f32 %v600_v42, %v598_v43 }
 0x21d   :  { %v604_v45 = vpop.permute.xlu0 %603 }
 0x21e   :  { %v606_v47 = vadd.f32 %v604_v45, %v602_v44 }
 0x220   :  { %608 = vst.msk [vmem:[#allocation6] sm:$0xff] %vm607_vm9, %v606_v47 }
 0x221   :  { %851 = shalt.err (!%p848_p9)
}
 0x222   :  { %772 = dma.vmem_to_hbm [thread:$0]  %s767_s23, 256, %s1255_s1, [#allocation5], %s865_s9, %s865_s9, %s866_s10  }
 0x223   :  { %862 = dma.done.wait [#allocation5], 256  }
 0x224   :  { %863 = vsyncadd [#allocation5], 4294967040 }
 0x225   :  { %776 = vsyncpa [#allocation4], 1 }
 0x226   :  { %777 = vsyncpa [#allocation5], 1 }

</bundles_post_ra>
